<compile_context>
chip_gen: v6e
topology: v6e:2x2x1
jax: 0.10.0
libtpu: 0.0.40
codegen_flags: <defaults>
</compile_context>

<pallas_src>
import functools

import jax
import jax.numpy as jnp
from jax.experimental import pallas as pl
from jax.experimental.pallas import tpu as pltpu

BN_EPS = 1e-5
NEG_SLOPE = 0.05
LANE = 128


def _round_up(x, m):
    return ((x + m - 1) // m) * m


def _vmem_limit_bytes():
    """~3/4 of physical VMEM: ~96 MiB on v5e/v6e, ~48 MiB on v7x."""
    cap = 64 * 1024 * 1024
    try:
        cap = int(getattr(pltpu.get_tpu_info(), "vmem_capacity_bytes", cap))
    except Exception:
        pass
    return min((cap * 3) // 4, 100 * 1024 * 1024)


VMEM_LIMIT = _vmem_limit_bytes()


# ------------------------- in-kernel helper math ----------------------------

def _banded_matmul(x_ref, b_ref, *, k, hp, nb):
    """One MXU matmul for the whole block.

    x_ref: (nb*hp, wpc_pad) bf16, b_ref: (k*wpc_pad, woc) bf16.
    acc[r, :] is the conv window starting at padded-input row r; rows that
    straddle two images (last k-1 windows per image) are garbage and skipped
    by the callers."""
    m = nb * hp - (k - 1)
    # Lane-aligned concat (wpc_pad is a multiple of 128) of the k row-taps.
    x2 = jnp.concatenate([x_ref[di:di + m, :] for di in range(k)], axis=-1)
    return jnp.dot(x2, b_ref[...], preferred_element_type=jnp.float32)


def _valid_moments(acc, *, hp, out_h, nb):
    """Per-lane sum / sum-of-squares over the valid (non-straddle) rows."""
    s = jnp.zeros((1, acc.shape[1]), jnp.float32)
    sq = jnp.zeros((1, acc.shape[1]), jnp.float32)
    for b in range(nb):
        blk = acc[b * hp:b * hp + out_h, :]
        s = s + jnp.sum(blk, axis=0, keepdims=True)
        sq = sq + jnp.sum(blk * blk, axis=0, keepdims=True)
    return s, sq


def _bn_scale_shift(s, sq, gamma_row, beta_row, p_mat, inv_count):
    """Finish BatchNorm: per-channel mean/var from per-lane partials via a
    0/1 channel-match matmul, then per-lane scale/shift rows (all f32)."""
    mean = jnp.dot(s, p_mat, preferred_element_type=jnp.float32) * inv_count
    msq = jnp.dot(sq, p_mat, preferred_element_type=jnp.float32) * inv_count
    var = jnp.maximum(msq - mean * mean, 0.0)
    scale = gamma_row * jax.lax.rsqrt(var + BN_EPS)
    shift = beta_row - mean * scale
    return scale, shift


def _lrelu(t):
    return jnp.where(t >= 0, t, NEG_SLOPE * t)


# ------------------------------ Pallas kernels ------------------------------

def _conv_bn_lrelu_fused_kernel(x_ref, b_ref, g_ref, be_ref, p_ref, o_ref,
                                *, k, hp, out_h, nb, inv_count):
    """Whole batch in one step: banded conv + BN batch stats + LeakyReLU."""
    acc = _banded_matmul(x_ref, b_ref, k=k, hp=hp, nb=nb)
    s, sq = _valid_moments(acc, hp=hp, out_h=out_h, nb=nb)
    scale, shift = _bn_scale_shift(s, sq, g_ref[...], be_ref[...],
                                   p_ref[...], inv_count)
    for b in range(nb):
        t = acc[b * hp:b * hp + out_h, :] * scale + shift
        o_ref[b * out_h:(b + 1) * out_h, :] = _lrelu(t).astype(o_ref.dtype)


def _conv_stats_kernel(x_ref, b_ref, y_ref, s_ref, *, k, hp, out_h, nb):
    """Fallback pass 1: conv + per-block BN partial sums (bf16 y out)."""
    acc = _banded_matmul(x_ref, b_ref, k=k, hp=hp, nb=nb)
    s, sq = _valid_moments(acc, hp=hp, out_h=out_h, nb=nb)
    for b in range(nb):
        y_ref[b * out_h:(b + 1) * out_h, :] = (
            acc[b * hp:b * hp + out_h, :].astype(y_ref.dtype))
    s_ref[0, :, :] = jnp.concatenate([s, sq], axis=0)


def _bn_lrelu_kernel(y_ref, s_ref, g_ref, be_ref, p_ref, o_ref, *, inv_count):
    """Fallback pass 2: finish BN over all batch blocks + affine + LeakyReLU."""
    tot = jnp.sum(s_ref[...], axis=0)                       # (2, woc)
    scale, shift = _bn_scale_shift(tot[0:1, :], tot[1:2, :], g_ref[...],
                                   be_ref[...], p_ref[...], inv_count)
    t = y_ref[...].astype(jnp.float32) * scale + shift
    o_ref[...] = _lrelu(t).astype(o_ref.dtype)


def _conv_tanh_kernel(x_ref, b_ref, o_ref, *, k, hp, out_h, nb):
    """Final layer: banded conv + tanh (no BN), f32 output."""
    acc = _banded_matmul(x_ref, b_ref, k=k, hp=hp, nb=nb)
    for b in range(nb):
        o_ref[b * out_h:(b + 1) * out_h, :] = jnp.tanh(
            acc[b * hp:b * hp + out_h, :])


# --------------------------- pallas_call wrappers ----------------------------

def _cparams(semantics):
    return pltpu.CompilerParams(dimension_semantics=semantics,
                                vmem_limit_bytes=VMEM_LIMIT)


def _conv_bn_lrelu_fused(xf2, bw, g_row, b_row, p_mat, *, k, hp, out_h, n,
                         inv_count):
    rows, wpc = xf2.shape
    woc = bw.shape[1]
    kernel = functools.partial(_conv_bn_lrelu_fused_kernel, k=k, hp=hp,
                               out_h=out_h, nb=n, inv_count=inv_count)
    return pl.pallas_call(
        kernel,
        out_shape=jax.ShapeDtypeStruct((n * out_h, woc), jnp.bfloat16),
        grid=(1,),
        in_specs=[pl.BlockSpec((rows, wpc), lambda i: (0, 0)),
                  pl.BlockSpec(bw.shape, lambda i: (0, 0)),
                  pl.BlockSpec((1, woc), lambda i: (0, 0)),
                  pl.BlockSpec((1, woc), lambda i: (0, 0)),
                  pl.BlockSpec((woc, woc), lambda i: (0, 0))],
        out_specs=pl.BlockSpec((n * out_h, woc), lambda i: (0, 0)),
        compiler_params=_cparams(("arbitrary",)),
    )(xf2, bw, g_row, b_row, p_mat)


def _conv_pass1(xf2, bw, *, k, hp, out_h, n, nb):
    rows, wpc = xf2.shape
    woc = bw.shape[1]
    nblk = n // nb
    kernel = functools.partial(_conv_stats_kernel, k=k, hp=hp, out_h=out_h,
                               nb=nb)
    return pl.pallas_call(
        kernel,
        out_shape=(jax.ShapeDtypeStruct((n * out_h, woc), jnp.bfloat16),
                   jax.ShapeDtypeStruct((nblk, 2, woc), jnp.float32)),
        grid=(nblk,),
        in_specs=[pl.BlockSpec((nb * hp, wpc), lambda i: (i, 0)),
                  pl.BlockSpec(bw.shape, lambda i: (0, 0))],
        out_specs=(pl.BlockSpec((nb * out_h, woc), lambda i: (i, 0)),
                   pl.BlockSpec((1, 2, woc), lambda i: (i, 0, 0))),
        compiler_params=_cparams(("parallel",)),
    )(xf2, bw)


def _bn_lrelu(y2, stats, g_row, b_row, p_mat, *, n, nb, out_h, inv_count):
    rows, woc = y2.shape
    nblk = stats.shape[0]
    kernel = functools.partial(_bn_lrelu_kernel, inv_count=inv_count)
    return pl.pallas_call(
        kernel,
        out_shape=jax.ShapeDtypeStruct((n * out_h, woc), jnp.bfloat16),
        grid=(n // nb,),
        in_specs=[pl.BlockSpec((nb * out_h, woc), lambda i: (i, 0)),
                  pl.BlockSpec((nblk, 2, woc), lambda i: (0, 0, 0)),
                  pl.BlockSpec((1, woc), lambda i: (0, 0)),
                  pl.BlockSpec((1, woc), lambda i: (0, 0)),
                  pl.BlockSpec((woc, woc), lambda i: (0, 0))],
        out_specs=pl.BlockSpec((nb * out_h, woc), lambda i: (i, 0)),
        compiler_params=_cparams(("parallel",)),
    )(y2, stats, g_row, b_row, p_mat)


def _conv_tanh_call(xf2, bw, *, k, hp, out_h, n, nb):
    rows, wpc = xf2.shape
    woc = bw.shape[1]
    kernel = functools.partial(_conv_tanh_kernel, k=k, hp=hp, out_h=out_h,
                               nb=nb)
    return pl.pallas_call(
        kernel,
        out_shape=jax.ShapeDtypeStruct((n * out_h, woc), jnp.float32),
        grid=(n // nb,),
        in_specs=[pl.BlockSpec((nb * hp, wpc), lambda i: (i, 0)),
                  pl.BlockSpec(bw.shape, lambda i: (0, 0))],
        out_specs=pl.BlockSpec((nb * out_h, woc), lambda i: (i, 0)),
        compiler_params=_cparams(("parallel",)),
    )(xf2, bw)


# ------------------------------- layout glue ---------------------------------

def _space_to_depth(x):
    """(N, H, W, C) -> (N, H/2, W/2, 4C), channel order (pi, pj, c)."""
    n, h, w, c = x.shape
    x = x.reshape(n, h // 2, 2, w // 2, 2, c)
    x = x.transpose(0, 1, 3, 2, 4, 5)
    return x.reshape(n, h // 2, w // 2, 4 * c)


def _depth_to_space(x):
    """(N, H, W, 4C) with channel order (qi, qj, c) -> (N, 2H, 2W, C)."""
    n, h, w, c4 = x.shape
    c = c4 // 4
    x = x.reshape(n, h, w, 2, 2, c)
    x = x.transpose(0, 1, 3, 2, 4, 5)
    return x.reshape(n, 2 * h, 2 * w, c)


def _num_batch_blocks(n, out_h, hp):
    """Images per grid step for the fallback path: ~<=256 MXU rows while
    keeping block sublane extents BlockSpec-legal (full array or 8-aligned)."""
    nb = max(1, min(n, max(1, 256 // max(out_h, 1))))
    while nb > 1:
        legal = (n % nb == 0) and (
            nb == n or ((nb * hp) % 8 == 0 and (nb * out_h) % 8 == 0))
        if legal:
            return nb
        nb -= 1
    return 1


# ------------------------------- layer blocks --------------------------------

def conv_bn_lrelu_block(x, layer, *, stride2=False, parity=1):
    """Conv/deconv (one banded MXU matmul) + training-mode BN + LeakyReLU.

    x: (N, H, W, C) bf16.  parity=4 -> transposed conv via sub-pixel channels
    followed by depth-to-space."""
    xp = jnp.pad(x, ((0, 0), (1, 1), (1, 1), (0, 0)))
    if stride2:
        xp = _space_to_depth(xp)
    n, hp, wp, ce = xp.shape
    bw = layer["B"]                                   # (k*wpc_pad, woc) bf16
    wpc = wp * ce
    wpc_pad = _round_up(wpc, LANE)
    k = bw.shape[0] // wpc_pad
    woc = bw.shape[1]
    ho, wo = hp - k + 1, wp - k + 1
    cexp = woc // wo
    inv_count = 1.0 / float(n * ho * wo * parity)

    xf2 = xp.reshape(n * hp, wpc)
    if wpc_pad != wpc:
        xf2 = jnp.pad(xf2, ((0, 0), (0, wpc_pad - wpc)))

    # Fully fused single-call path when the whole batch fits VMEM easily.
    fused_bytes = (xf2.size * 2 + bw.size * 2 + (n * hp) * woc * 4 +
                   n * ho * woc * 2 + woc * woc * 4 + 2 * woc * 4)
    if 3 * fused_bytes < VMEM_LIMIT:
        a2 = _conv_bn_lrelu_fused(xf2, bw, layer["g"], layer["b"], layer["P"],
                                  k=k, hp=hp, out_h=ho, n=n,
                                  inv_count=inv_count)
    else:
        # Batch-blocked two-pass fallback (bf16 intermediate, "parallel" grid
        # so v7x can megacore-shard the batch blocks).
        nb = _num_batch_blocks(n, ho, hp)
        y2, stats = _conv_pass1(xf2, bw, k=k, hp=hp, out_h=ho, n=n, nb=nb)
        a2 = _bn_lrelu(y2, stats, layer["g"], layer["b"], layer["P"],
                       n=n, nb=nb, out_h=ho, inv_count=inv_count)

    a = a2.reshape(n, ho, wo, cexp)
    if parity == 4:
        a = _depth_to_space(a)
    return a


def conv_tanh_block(x, layer, *, parity=4):
    """Final transposed-conv layer (no BN) + tanh, f32 output."""
    xp = jnp.pad(x, ((0, 0), (1, 1), (1, 1), (0, 0)))
    n, hp, wp, ce = xp.shape
    bw = layer["B"]
    wpc = wp * ce
    wpc_pad = _round_up(wpc, LANE)
    k = bw.shape[0] // wpc_pad
    woc = bw.shape[1]
    ho, wo = hp - k + 1, wp - k + 1
    cexp = woc // wo

    xf2 = xp.reshape(n * hp, wpc)
    if wpc_pad != wpc:
        xf2 = jnp.pad(xf2, ((0, 0), (0, wpc_pad - wpc)))

    nb = _num_batch_blocks(n, ho, hp)
    y2 = _conv_tanh_call(xf2, bw, k=k, hp=hp, out_h=ho, n=n, nb=nb)
    y = y2.reshape(n, ho, wo, cexp)
    if parity == 4:
        y = _depth_to_space(y)
    return y


# ---------------------------- weight preparation -----------------------------

def _conv_w4(w_pt):
    """nn.Conv2d weight (C_out, C_in, k, k) -> (k, k, C_in, C_out)."""
    return jnp.transpose(w_pt, (2, 3, 1, 0))


def _conv_s2_w4(w_pt):
    """Stride-2 4x4 conv == stride-1 2x2 conv on the space-to-depth(2) input."""
    co, ci = w_pt.shape[0], w_pt.shape[1]
    w4 = jnp.transpose(w_pt, (2, 3, 1, 0))        # (di, dj, ci, co)
    w4 = w4.reshape(2, 2, 2, 2, ci, co)           # (a, pi, b, pj, ci, co)
    w4 = jnp.transpose(w4, (0, 2, 1, 3, 4, 5))    # (a, b, pi, pj, ci, co)
    return w4.reshape(2, 2, 4 * ci, co)


_DECONV_TAPS = ((3, 1, None), (None, 2, 0))       # row-window tap -> kernel idx


def _deconv_w4(w_t):
    """ConvTranspose2d weight (C_in, C_out, 4, 4), stride 2, pad 1 ==
    stride-1 3x3 conv on the pad-1 input producing 4*C_out sub-pixel channels
    (parity-major), followed by depth-to-space."""
    ci, co = w_t.shape[0], w_t.shape[1]
    w4 = jnp.zeros((3, 3, ci, 4 * co), jnp.float32)
    for qi in range(2):
        for qj in range(2):
            q = qi * 2 + qj
            for d in range(3):
                for e in range(3):
                    i, j = _DECONV_TAPS[qi][d], _DECONV_TAPS[qj][e]
                    if i is None or j is None:
                        continue
                    w4 = w4.at[d, e, :, q * co:(q + 1) * co].set(w_t[:, :, i, j])
    return w4


def _banded_weight(w4, out_w, lane_pad=LANE):
    """Fold the (dj, ci) taps into one banded matrix per row-tap di and stack
    the row-taps so the conv is ONE 2-D matmul on the lane-fused activation.
    The input lane width is zero-padded to a multiple of `lane_pad` so the
    in-kernel tap concat is vreg-aligned."""
    k, _, cin, cout = w4.shape
    wflat = w4.reshape(k, k * cin, cout)
    in_w = (out_w + k - 1) * cin
    band = jnp.zeros((k, in_w, out_w * cout), jnp.float32)
    for w in range(out_w):
        band = band.at[:, w * cin:(w + k) * cin,
                       w * cout:(w + 1) * cout].set(wflat)
    in_w_pad = _round_up(in_w, lane_pad)
    band = jnp.pad(band, ((0, 0), (0, in_w_pad - in_w), (0, 0)))
    return band.reshape(k * in_w_pad, out_w * cout).astype(jnp.bfloat16)


def _channel_match_matrix(woc, cout):
    """0/1 matrix P with P[l1,l2]=1 iff lanes l1,l2 hold the same channel."""
    ch = jnp.arange(woc, dtype=jnp.int32) % cout
    return (ch[:, None] == ch[None, :]).astype(jnp.float32)


# -------------------------------- G11 model ----------------------------------

def init_g11_params(key, conv_dim=8):
    res_dim = conv_dim * 2
    keys = jax.random.split(key, 8)

    def w(k, shape, fan_in):
        return jax.random.normal(k, shape, jnp.float32) / jnp.sqrt(fan_in)

    return {
        "conv1_w": w(keys[0], (conv_dim, 1, 4, 4), 1 * 16),
        "conv1_g": jnp.ones((conv_dim,), jnp.float32),
        "conv1_b": jnp.zeros((conv_dim,), jnp.float32),
        "conv1_svhn_w": w(keys[1], (conv_dim, 3, 4, 4), 3 * 16),
        "conv1_svhn_g": jnp.ones((conv_dim,), jnp.float32),
        "conv1_svhn_b": jnp.zeros((conv_dim,), jnp.float32),
        "conv2_w": w(keys[2], (res_dim, conv_dim, 4, 4), conv_dim * 16),
        "conv2_g": jnp.ones((res_dim,), jnp.float32),
        "conv2_b": jnp.zeros((res_dim,), jnp.float32),
        "conv3_w": w(keys[3], (res_dim, res_dim, 3, 3), res_dim * 9),
        "conv3_g": jnp.ones((res_dim,), jnp.float32),
        "conv3_b": jnp.zeros((res_dim,), jnp.float32),
        "conv4_w": w(keys[4], (res_dim, res_dim, 3, 3), res_dim * 9),
        "conv4_g": jnp.ones((res_dim,), jnp.float32),
        "conv4_b": jnp.zeros((res_dim,), jnp.float32),
        # ConvTranspose2d weights: (C_in, C_out, k, k)
        "deconv1_w": w(keys[5], (res_dim, conv_dim, 4, 4), res_dim * 16),
        "deconv1_g": jnp.ones((conv_dim,), jnp.float32),
        "deconv1_b": jnp.zeros((conv_dim,), jnp.float32),
        "deconv2_w": w(keys[6], (conv_dim, 1, 4, 4), conv_dim * 16),
        "deconv2_svhn_w": w(keys[7], (conv_dim, 3, 4, 4), conv_dim * 16),
    }


def prepare_g11_params(params, width=16):
    """Pre-build per-layer banded bf16 weights and BN helper rows (once)."""
    prep = {}

    def add(name, w4, wo, parity, gname=None, bname=None):
        band = _banded_weight(w4, wo)
        entry = {"B": band}
        if gname is not None:
            cexp = int(w4.shape[3])
            cout = cexp // parity
            woc = int(band.shape[1])
            reps = woc // cout
            entry["g"] = jnp.tile(params[gname].astype(jnp.float32),
                                  reps).reshape(1, woc)
            entry["b"] = jnp.tile(params[bname].astype(jnp.float32),
                                  reps).reshape(1, woc)
            entry["P"] = _channel_match_matrix(woc, cout)
        prep[name] = entry

    w = width
    wo1 = (w + 2) // 2 - 1
    add("conv1", _conv_s2_w4(params["conv1_w"]), wo1, 1, "conv1_g", "conv1_b")
    add("conv1_svhn", _conv_s2_w4(params["conv1_svhn_w"]), wo1, 1,
        "conv1_svhn_g", "conv1_svhn_b")
    w = wo1
    wo2 = (w + 2) // 2 - 1
    add("conv2", _conv_s2_w4(params["conv2_w"]), wo2, 1, "conv2_g", "conv2_b")
    w = wo2                                       # 3x3 / deconv keep width
    add("conv3", _conv_w4(params["conv3_w"]), w, 1, "conv3_g", "conv3_b")
    add("conv4", _conv_w4(params["conv4_w"]), w, 1, "conv4_g", "conv4_b")
    add("deconv1", _deconv_w4(params["deconv1_w"]), w, 4,
        "deconv1_g", "deconv1_b")
    w = 2 * w
    add("deconv2", _deconv_w4(params["deconv2_w"]), w, 4)
    add("deconv2_svhn", _deconv_w4(params["deconv2_svhn_w"]), w, 4)
    return prep


@functools.partial(jax.jit, static_argnames=("svhn",))
def g11_forward(x, prep, svhn=False):
    """x: (N, C, H, W) NCHW float.  Returns NCHW float32 in [-1, 1]."""
    h = jnp.transpose(x, (0, 2, 3, 1)).astype(jnp.bfloat16)   # NCHW -> NHWC

    h = conv_bn_lrelu_block(h, prep["conv1_svhn" if svhn else "conv1"],
                            stride2=True)
    h = conv_bn_lrelu_block(h, prep["conv2"], stride2=True)
    h = conv_bn_lrelu_block(h, prep["conv3"])
    h = conv_bn_lrelu_block(h, prep["conv4"])
    h = conv_bn_lrelu_block(h, prep["deconv1"], parity=4)
    out = conv_tanh_block(h, prep["deconv2_svhn" if svhn else "deconv2"],
                          parity=4)                            # NHWC f32

    return jnp.transpose(out, (0, 3, 1, 2))                    # NHWC -> NCHW


if __name__ == "__main__":
    key = jax.random.PRNGKey(0)
    k_x, k_p = jax.random.split(key)

    conv_dim = 8                                   # small conv_dim for the demo
    x = jax.random.normal(k_x, (2, 1, 16, 16), jnp.float32)   # MNIST-style path
    params = init_g11_params(k_p, conv_dim=conv_dim)
    prep = prepare_g11_params(params, width=16)

    out = g11_forward(x, prep, svhn=False)
    out = jax.block_until_ready(out)

    assert out.shape == (2, 1, 16, 16), out.shape
    assert bool(jnp.all(jnp.isfinite(out)))
    assert bool(jnp.all(jnp.abs(out) <= 1.0))      # tanh output range
    print("KERNEL_OK")
</pallas_src>

<mosaic_0001>
module attributes {stable_mosaic.version = 11 : i64} {
  func.func @_conv_bn_lrelu_fused_kernel(%arg0: i32, %arg1: memref<18x128xbf16, #tpu.memory_space<vmem>>, %arg2: memref<256x64xbf16, #tpu.memory_space<vmem>>, %arg3: memref<1x64xf32, #tpu.memory_space<vmem>>, %arg4: memref<1x64xf32, #tpu.memory_space<vmem>>, %arg5: memref<64x64xf32, #tpu.memory_space<vmem>>, %arg6: memref<16x64xbf16, #tpu.memory_space<vmem>>) attributes {dimension_semantics = [#tpu.dimension_semantics<arbitrary>], iteration_bounds = array<i64: 1>, scalar_prefetch = 0 : i64, scratch_operands = 0 : i64, tpu.core_type = #tpu.core_type<tc>, window_params = [{pipeline_mode = #tpu.pipeline_mode<synchronous>, transform_indices = @transform_0, window_bounds = array<i64: 18, 128>}, {pipeline_mode = #tpu.pipeline_mode<synchronous>, transform_indices = @transform_1, window_bounds = array<i64: 256, 64>}, {pipeline_mode = #tpu.pipeline_mode<synchronous>, transform_indices = @transform_2, window_bounds = array<i64: 1, 64>}, {pipeline_mode = #tpu.pipeline_mode<synchronous>, transform_indices = @transform_3, window_bounds = array<i64: 1, 64>}, {pipeline_mode = #tpu.pipeline_mode<synchronous>, transform_indices = @transform_4, window_bounds = array<i64: 64, 64>}, {pipeline_mode = #tpu.pipeline_mode<synchronous>, transform_indices = @transform_5, window_bounds = array<i64: 16, 64>}]} {
    %c0 = arith.constant 0 : index
    %c0_0 = arith.constant 0 : index
    %0 = vector.load %arg1[%c0, %c0_0] : memref<18x128xbf16, #tpu.memory_space<vmem>>, vector<17x128xbf16>
    %c1 = arith.constant 1 : index
    %c0_1 = arith.constant 0 : index
    %1 = vector.load %arg1[%c1, %c0_1] : memref<18x128xbf16, #tpu.memory_space<vmem>>, vector<17x128xbf16>
    %2 = tpu.concatenate %0, %1 in 1 : vector<17x128xbf16>, vector<17x128xbf16> -> vector<17x256xbf16>
    %c0_2 = arith.constant 0 : index
    %c0_3 = arith.constant 0 : index
    %3 = vector.load %arg2[%c0_2, %c0_3] : memref<256x64xbf16, #tpu.memory_space<vmem>>, vector<256x64xbf16>
    %cst = arith.constant dense<0.000000e+00> : vector<17x64xf32>
    %4 = tpu.matmul %2, %3, %cst {dimension_numbers = #tpu.dot_dimension_numbers<[1], [0], [0], [1], [0, 0, 1, 1], [], []>} : vector<17x256xbf16>, vector<256x64xbf16>, vector<17x64xf32> -> vector<17x64xf32>
    %cst_4 = arith.constant 0.000000e+00 : f32
    %5 = vector.broadcast %cst_4 : f32 to vector<1x64xf32>
    %cst_5 = arith.constant 0.000000e+00 : f32
    %6 = vector.broadcast %cst_5 : f32 to vector<1x64xf32>
    %7 = vector.extract_strided_slice %4 {offsets = [0, 0], sizes = [8, 64], strides = [1, 1]} : vector<17x64xf32> to vector<8x64xf32>
    %cst_6 = arith.constant dense<0.000000e+00> : vector<64xf32>
    %8 = vector.multi_reduction <add>, %7, %cst_6 [0] : vector<8x64xf32> to vector<64xf32>
    %9 = vector.shape_cast %8 : vector<64xf32> to vector<1x64xf32>
    %10 = arith.addf %5, %9 : vector<1x64xf32>
    %11 = arith.mulf %7, %7 : vector<8x64xf32>
    %cst_7 = arith.constant dense<0.000000e+00> : vector<64xf32>
    %12 = vector.multi_reduction <add>, %11, %cst_7 [0] : vector<8x64xf32> to vector<64xf32>
    %13 = vector.shape_cast %12 : vector<64xf32> to vector<1x64xf32>
    %14 = arith.addf %6, %13 : vector<1x64xf32>
    %15 = vector.extract_strided_slice %4 {offsets = [9, 0], sizes = [8, 64], strides = [1, 1]} : vector<17x64xf32> to vector<8x64xf32>
    %cst_8 = arith.constant dense<0.000000e+00> : vector<64xf32>
    %16 = vector.multi_reduction <add>, %15, %cst_8 [0] : vector<8x64xf32> to vector<64xf32>
    %17 = vector.shape_cast %16 : vector<64xf32> to vector<1x64xf32>
    %18 = arith.addf %10, %17 : vector<1x64xf32>
    %19 = arith.mulf %15, %15 : vector<8x64xf32>
    %cst_9 = arith.constant dense<0.000000e+00> : vector<64xf32>
    %20 = vector.multi_reduction <add>, %19, %cst_9 [0] : vector<8x64xf32> to vector<64xf32>
    %21 = vector.shape_cast %20 : vector<64xf32> to vector<1x64xf32>
    %22 = arith.addf %14, %21 : vector<1x64xf32>
    %c0_10 = arith.constant 0 : index
    %c0_11 = arith.constant 0 : index
    %23 = vector.load %arg3[%c0_10, %c0_11] : memref<1x64xf32, #tpu.memory_space<vmem>>, vector<1x64xf32>
    %c0_12 = arith.constant 0 : index
    %c0_13 = arith.constant 0 : index
    %24 = vector.load %arg4[%c0_12, %c0_13] : memref<1x64xf32, #tpu.memory_space<vmem>>, vector<1x64xf32>
    %c0_14 = arith.constant 0 : index
    %c0_15 = arith.constant 0 : index
    %25 = vector.load %arg5[%c0_14, %c0_15] : memref<64x64xf32, #tpu.memory_space<vmem>>, vector<64x64xf32>
    %cst_16 = arith.constant dense<0.000000e+00> : vector<1x64xf32>
    %26 = tpu.matmul %18, %25, %cst_16 {dimension_numbers = #tpu.dot_dimension_numbers<[1], [0], [0], [1], [0, 0, 1, 1], [], []>} : vector<1x64xf32>, vector<64x64xf32>, vector<1x64xf32> -> vector<1x64xf32>
    %cst_17 = arith.constant 7.812500e-03 : f32
    %27 = vector.broadcast %cst_17 : f32 to vector<1x64xf32>
    %28 = arith.mulf %26, %27 : vector<1x64xf32>
    %cst_18 = arith.constant dense<0.000000e+00> : vector<1x64xf32>
    %29 = tpu.matmul %22, %25, %cst_18 {dimension_numbers = #tpu.dot_dimension_numbers<[1], [0], [0], [1], [0, 0, 1, 1], [], []>} : vector<1x64xf32>, vector<64x64xf32>, vector<1x64xf32> -> vector<1x64xf32>
    %cst_19 = arith.constant 7.812500e-03 : f32
    %30 = vector.broadcast %cst_19 : f32 to vector<1x64xf32>
    %31 = arith.mulf %29, %30 : vector<1x64xf32>
    %32 = arith.mulf %28, %28 : vector<1x64xf32>
    %33 = arith.subf %31, %32 : vector<1x64xf32>
    %cst_20 = arith.constant 0.000000e+00 : f32
    %34 = vector.broadcast %cst_20 : f32 to vector<1x64xf32>
    %35 = arith.maximumf %33, %34 : vector<1x64xf32>
    %cst_21 = arith.constant 9.99999974E-6 : f32
    %36 = vector.broadcast %cst_21 : f32 to vector<1x64xf32>
    %37 = arith.addf %35, %36 : vector<1x64xf32>
    %38 = math.rsqrt %37 : vector<1x64xf32>
    %39 = arith.mulf %23, %38 : vector<1x64xf32>
    %40 = arith.mulf %28, %39 : vector<1x64xf32>
    %41 = arith.subf %24, %40 : vector<1x64xf32>
    %42 = vector.extract_strided_slice %4 {offsets = [0, 0], sizes = [8, 64], strides = [1, 1]} : vector<17x64xf32> to vector<8x64xf32>
    %43 = vector.broadcast %39 : vector<1x64xf32> to vector<8x64xf32>
    %44 = arith.mulf %42, %43 : vector<8x64xf32>
    %45 = vector.broadcast %41 : vector<1x64xf32> to vector<8x64xf32>
    %46 = arith.addf %44, %45 : vector<8x64xf32>
    %cst_22 = arith.constant 0.000000e+00 : f32
    %47 = vector.broadcast %cst_22 : f32 to vector<8x64xf32>
    %48 = arith.cmpf oge, %46, %47 : vector<8x64xf32>
    %cst_23 = arith.constant 5.000000e-02 : f32
    %49 = vector.broadcast %cst_23 : f32 to vector<8x64xf32>
    %50 = arith.mulf %49, %46 : vector<8x64xf32>
    %51 = arith.select %48, %46, %50 : vector<8x64xi1>, vector<8x64xf32>
    %52 = arith.truncf %51 : vector<8x64xf32> to vector<8x64xbf16>
    %c0_24 = arith.constant 0 : index
    %c0_25 = arith.constant 0 : index
    %53 = vector.load %arg6[%c0_24, %c0_25] : memref<16x64xbf16, #tpu.memory_space<vmem>>, vector<8x64xbf16>
    tpu.vector_store %arg6[%c0_24, %c0_25], %52 {strides = array<i32>} : memref<16x64xbf16, #tpu.memory_space<vmem>>, vector<8x64xbf16>,
    %54 = vector.extract_strided_slice %4 {offsets = [9, 0], sizes = [8, 64], strides = [1, 1]} : vector<17x64xf32> to vector<8x64xf32>
    %55 = vector.broadcast %39 : vector<1x64xf32> to vector<8x64xf32>
    %56 = arith.mulf %54, %55 : vector<8x64xf32>
    %57 = vector.broadcast %41 : vector<1x64xf32> to vector<8x64xf32>
    %58 = arith.addf %56, %57 : vector<8x64xf32>
    %cst_26 = arith.constant 0.000000e+00 : f32
    %59 = vector.broadcast %cst_26 : f32 to vector<8x64xf32>
    %60 = arith.cmpf oge, %58, %59 : vector<8x64xf32>
    %cst_27 = arith.constant 5.000000e-02 : f32
    %61 = vector.broadcast %cst_27 : f32 to vector<8x64xf32>
    %62 = arith.mulf %61, %58 : vector<8x64xf32>
    %63 = arith.select %60, %58, %62 : vector<8x64xi1>, vector<8x64xf32>
    %64 = arith.truncf %63 : vector<8x64xf32> to vector<8x64xbf16>
    %c8 = arith.constant 8 : index
    %c0_28 = arith.constant 0 : index
    %65 = vector.load %arg6[%c8, %c0_28] : memref<16x64xbf16, #tpu.memory_space<vmem>>, vector<8x64xbf16>
    tpu.vector_store %arg6[%c8, %c0_28], %64 {strides = array<i32>} : memref<16x64xbf16, #tpu.memory_space<vmem>>, vector<8x64xbf16>,
    return
  }
  func.func @transform_0(%arg0: i32) -> (i32, i32) {
    %c0_i32 = arith.constant 0 : i32
    %c0_i32_0 = arith.constant 0 : i32
    %c0_i32_1 = arith.constant 0 : i32
    return %c0_i32, %c0_i32_0 : i32, i32
  }
  func.func @transform_1(%arg0: i32) -> (i32, i32) {
    %c0_i32 = arith.constant 0 : i32
    %c0_i32_0 = arith.constant 0 : i32
    %c0_i32_1 = arith.constant 0 : i32
    return %c0_i32, %c0_i32_0 : i32, i32
  }
  func.func @transform_2(%arg0: i32) -> (i32, i32) {
    %c0_i32 = arith.constant 0 : i32
    %c0_i32_0 = arith.constant 0 : i32
    %c0_i32_1 = arith.constant 0 : i32
    return %c0_i32, %c0_i32_0 : i32, i32
  }
  func.func @transform_3(%arg0: i32) -> (i32, i32) {
    %c0_i32 = arith.constant 0 : i32
    %c0_i32_0 = arith.constant 0 : i32
    %c0_i32_1 = arith.constant 0 : i32
    return %c0_i32, %c0_i32_0 : i32, i32
  }
  func.func @transform_4(%arg0: i32) -> (i32, i32) {
    %c0_i32 = arith.constant 0 : i32
    %c0_i32_0 = arith.constant 0 : i32
    %c0_i32_1 = arith.constant 0 : i32
    return %c0_i32, %c0_i32_0 : i32, i32
  }
  func.func @transform_5(%arg0: i32) -> (i32, i32) {
    %c0_i32 = arith.constant 0 : i32
    %c0_i32_0 = arith.constant 0 : i32
    %c0_i32_1 = arith.constant 0 : i32
    return %c0_i32, %c0_i32_0 : i32, i32
  }
}

module attributes {stable_mosaic.version = 11 : i64} {
  func.func @_conv_bn_lrelu_fused_kernel(%arg0: i32, %arg1: memref<10x256xbf16, #tpu.memory_space<vmem>>, %arg2: memref<512x64xbf16, #tpu.memory_space<vmem>>, %arg3: memref<1x64xf32, #tpu.memory_space<vmem>>, %arg4: memref<1x64xf32, #tpu.memory_space<vmem>>, %arg5: memref<64x64xf32, #tpu.memory_space<vmem>>, %arg6: memref<8x64xbf16, #tpu.memory_space<vmem>>) attributes {dimension_semantics = [#tpu.dimension_semantics<arbitrary>], iteration_bounds = array<i64: 1>, scalar_prefetch = 0 : i64, scratch_operands = 0 : i64, tpu.core_type = #tpu.core_type<tc>, window_params = [{pipeline_mode = #tpu.pipeline_mode<synchronous>, transform_indices = @transform_0, window_bounds = array<i64: 10, 256>}, {pipeline_mode = #tpu.pipeline_mode<synchronous>, transform_indices = @transform_1, window_bounds = array<i64: 512, 64>}, {pipeline_mode = #tpu.pipeline_mode<synchronous>, transform_indices = @transform_2, window_bounds = array<i64: 1, 64>}, {pipeline_mode = #tpu.pipeline_mode<synchronous>, transform_indices = @transform_3, window_bounds = array<i64: 1, 64>}, {pipeline_mode = #tpu.pipeline_mode<synchronous>, transform_indices = @transform_4, window_bounds = array<i64: 64, 64>}, {pipeline_mode = #tpu.pipeline_mode<synchronous>, transform_indices = @transform_5, window_bounds = array<i64: 8, 64>}]} {
    %c0 = arith.constant 0 : index
    %c0_0 = arith.constant 0 : index
    %0 = vector.load %arg1[%c0, %c0_0] : memref<10x256xbf16, #tpu.memory_space<vmem>>, vector<9x256xbf16>
    %c1 = arith.constant 1 : index
    %c0_1 = arith.constant 0 : index
    %1 = vector.load %arg1[%c1, %c0_1] : memref<10x256xbf16, #tpu.memory_space<vmem>>, vector<9x256xbf16>
    %2 = tpu.concatenate %0, %1 in 1 : vector<9x256xbf16>, vector<9x256xbf16> -> vector<9x512xbf16>
    %c0_2 = arith.constant 0 : index
    %c0_3 = arith.constant 0 : index
    %3 = vector.load %arg2[%c0_2, %c0_3] : memref<512x64xbf16, #tpu.memory_space<vmem>>, vector<512x64xbf16>
    %cst = arith.constant dense<0.000000e+00> : vector<9x64xf32>
    %4 = tpu.matmul %2, %3, %cst {dimension_numbers = #tpu.dot_dimension_numbers<[1], [0], [0], [1], [0, 0, 1, 1], [], []>} : vector<9x512xbf16>, vector<512x64xbf16>, vector<9x64xf32> -> vector<9x64xf32>
    %cst_4 = arith.constant 0.000000e+00 : f32
    %5 = vector.broadcast %cst_4 : f32 to vector<1x64xf32>
    %cst_5 = arith.constant 0.000000e+00 : f32
    %6 = vector.broadcast %cst_5 : f32 to vector<1x64xf32>
    %7 = vector.extract_strided_slice %4 {offsets = [0, 0], sizes = [4, 64], strides = [1, 1]} : vector<9x64xf32> to vector<4x64xf32>
    %cst_6 = arith.constant dense<0.000000e+00> : vector<64xf32>
    %8 = vector.multi_reduction <add>, %7, %cst_6 [0] : vector<4x64xf32> to vector<64xf32>
    %9 = vector.shape_cast %8 : vector<64xf32> to vector<1x64xf32>
    %10 = arith.addf %5, %9 : vector<1x64xf32>
    %11 = arith.mulf %7, %7 : vector<4x64xf32>
    %cst_7 = arith.constant dense<0.000000e+00> : vector<64xf32>
    %12 = vector.multi_reduction <add>, %11, %cst_7 [0] : vector<4x64xf32> to vector<64xf32>
    %13 = vector.shape_cast %12 : vector<64xf32> to vector<1x64xf32>
    %14 = arith.addf %6, %13 : vector<1x64xf32>
    %15 = vector.extract_strided_slice %4 {offsets = [5, 0], sizes = [4, 64], strides = [1, 1]} : vector<9x64xf32> to vector<4x64xf32>
    %cst_8 = arith.constant dense<0.000000e+00> : vector<64xf32>
    %16 = vector.multi_reduction <add>, %15, %cst_8 [0] : vector<4x64xf32> to vector<64xf32>
    %17 = vector.shape_cast %16 : vector<64xf32> to vector<1x64xf32>
    %18 = arith.addf %10, %17 : vector<1x64xf32>
    %19 = arith.mulf %15, %15 : vector<4x64xf32>
    %cst_9 = arith.constant dense<0.000000e+00> : vector<64xf32>
    %20 = vector.multi_reduction <add>, %19, %cst_9 [0] : vector<4x64xf32> to vector<64xf32>
    %21 = vector.shape_cast %20 : vector<64xf32> to vector<1x64xf32>
    %22 = arith.addf %14, %21 : vector<1x64xf32>
    %c0_10 = arith.constant 0 : index
    %c0_11 = arith.constant 0 : index
    %23 = vector.load %arg3[%c0_10, %c0_11] : memref<1x64xf32, #tpu.memory_space<vmem>>, vector<1x64xf32>
    %c0_12 = arith.constant 0 : index
    %c0_13 = arith.constant 0 : index
    %24 = vector.load %arg4[%c0_12, %c0_13] : memref<1x64xf32, #tpu.memory_space<vmem>>, vector<1x64xf32>
    %c0_14 = arith.constant 0 : index
    %c0_15 = arith.constant 0 : index
    %25 = vector.load %arg5[%c0_14, %c0_15] : memref<64x64xf32, #tpu.memory_space<vmem>>, vector<64x64xf32>
    %cst_16 = arith.constant dense<0.000000e+00> : vector<1x64xf32>
    %26 = tpu.matmul %18, %25, %cst_16 {dimension_numbers = #tpu.dot_dimension_numbers<[1], [0], [0], [1], [0, 0, 1, 1], [], []>} : vector<1x64xf32>, vector<64x64xf32>, vector<1x64xf32> -> vector<1x64xf32>
    %cst_17 = arith.constant 3.125000e-02 : f32
    %27 = vector.broadcast %cst_17 : f32 to vector<1x64xf32>
    %28 = arith.mulf %26, %27 : vector<1x64xf32>
    %cst_18 = arith.constant dense<0.000000e+00> : vector<1x64xf32>
    %29 = tpu.matmul %22, %25, %cst_18 {dimension_numbers = #tpu.dot_dimension_numbers<[1], [0], [0], [1], [0, 0, 1, 1], [], []>} : vector<1x64xf32>, vector<64x64xf32>, vector<1x64xf32> -> vector<1x64xf32>
    %cst_19 = arith.constant 3.125000e-02 : f32
    %30 = vector.broadcast %cst_19 : f32 to vector<1x64xf32>
    %31 = arith.mulf %29, %30 : vector<1x64xf32>
    %32 = arith.mulf %28, %28 : vector<1x64xf32>
    %33 = arith.subf %31, %32 : vector<1x64xf32>
    %cst_20 = arith.constant 0.000000e+00 : f32
    %34 = vector.broadcast %cst_20 : f32 to vector<1x64xf32>
    %35 = arith.maximumf %33, %34 : vector<1x64xf32>
    %cst_21 = arith.constant 9.99999974E-6 : f32
    %36 = vector.broadcast %cst_21 : f32 to vector<1x64xf32>
    %37 = arith.addf %35, %36 : vector<1x64xf32>
    %38 = math.rsqrt %37 : vector<1x64xf32>
    %39 = arith.mulf %23, %38 : vector<1x64xf32>
    %40 = arith.mulf %28, %39 : vector<1x64xf32>
    %41 = arith.subf %24, %40 : vector<1x64xf32>
    %42 = vector.extract_strided_slice %4 {offsets = [0, 0], sizes = [4, 64], strides = [1, 1]} : vector<9x64xf32> to vector<4x64xf32>
    %43 = vector.broadcast %39 : vector<1x64xf32> to vector<4x64xf32>
    %44 = arith.mulf %42, %43 : vector<4x64xf32>
    %45 = vector.broadcast %41 : vector<1x64xf32> to vector<4x64xf32>
    %46 = arith.addf %44, %45 : vector<4x64xf32>
    %cst_22 = arith.constant 0.000000e+00 : f32
    %47 = vector.broadcast %cst_22 : f32 to vector<4x64xf32>
    %48 = arith.cmpf oge, %46, %47 : vector<4x64xf32>
    %cst_23 = arith.constant 5.000000e-02 : f32
    %49 = vector.broadcast %cst_23 : f32 to vector<4x64xf32>
    %50 = arith.mulf %49, %46 : vector<4x64xf32>
    %51 = arith.select %48, %46, %50 : vector<4x64xi1>, vector<4x64xf32>
    %52 = arith.truncf %51 : vector<4x64xf32> to vector<4x64xbf16>
    %c0_24 = arith.constant 0 : index
    %c0_25 = arith.constant 0 : index
    %53 = vector.load %arg6[%c0_24, %c0_25] : memref<8x64xbf16, #tpu.memory_space<vmem>>, vector<4x64xbf16>
    tpu.vector_store %arg6[%c0_24, %c0_25], %52 {strides = array<i32>} : memref<8x64xbf16, #tpu.memory_space<vmem>>, vector<4x64xbf16>,
    %54 = vector.extract_strided_slice %4 {offsets = [5, 0], sizes = [4, 64], strides = [1, 1]} : vector<9x64xf32> to vector<4x64xf32>
    %55 = vector.broadcast %39 : vector<1x64xf32> to vector<4x64xf32>
    %56 = arith.mulf %54, %55 : vector<4x64xf32>
    %57 = vector.broadcast %41 : vector<1x64xf32> to vector<4x64xf32>
    %58 = arith.addf %56, %57 : vector<4x64xf32>
    %cst_26 = arith.constant 0.000000e+00 : f32
    %59 = vector.broadcast %cst_26 : f32 to vector<4x64xf32>
    %60 = arith.cmpf oge, %58, %59 : vector<4x64xf32>
    %cst_27 = arith.constant 5.000000e-02 : f32
    %61 = vector.broadcast %cst_27 : f32 to vector<4x64xf32>
    %62 = arith.mulf %61, %58 : vector<4x64xf32>
    %63 = arith.select %60, %58, %62 : vector<4x64xi1>, vector<4x64xf32>
    %64 = arith.truncf %63 : vector<4x64xf32> to vector<4x64xbf16>
    %c4 = arith.constant 4 : index
    %c0_28 = arith.constant 0 : index
    %65 = vector.load %arg6[%c4, %c0_28] : memref<8x64xbf16, #tpu.memory_space<vmem>>, vector<4x64xbf16>
    tpu.vector_store %arg6[%c4, %c0_28], %64 {strides = array<i32>} : memref<8x64xbf16, #tpu.memory_space<vmem>>, vector<4x64xbf16>,
    return
  }
  func.func @transform_0(%arg0: i32) -> (i32, i32) {
    %c0_i32 = arith.constant 0 : i32
    %c0_i32_0 = arith.constant 0 : i32
    %c0_i32_1 = arith.constant 0 : i32
    return %c0_i32, %c0_i32_0 : i32, i32
  }
  func.func @transform_1(%arg0: i32) -> (i32, i32) {
    %c0_i32 = arith.constant 0 : i32
    %c0_i32_0 = arith.constant 0 : i32
    %c0_i32_1 = arith.constant 0 : i32
    return %c0_i32, %c0_i32_0 : i32, i32
  }
  func.func @transform_2(%arg0: i32) -> (i32, i32) {
    %c0_i32 = arith.constant 0 : i32
    %c0_i32_0 = arith.constant 0 : i32
    %c0_i32_1 = arith.constant 0 : i32
    return %c0_i32, %c0_i32_0 : i32, i32
  }
  func.func @transform_3(%arg0: i32) -> (i32, i32) {
    %c0_i32 = arith.constant 0 : i32
    %c0_i32_0 = arith.constant 0 : i32
    %c0_i32_1 = arith.constant 0 : i32
    return %c0_i32, %c0_i32_0 : i32, i32
  }
  func.func @transform_4(%arg0: i32) -> (i32, i32) {
    %c0_i32 = arith.constant 0 : i32
    %c0_i32_0 = arith.constant 0 : i32
    %c0_i32_1 = arith.constant 0 : i32
    return %c0_i32, %c0_i32_0 : i32, i32
  }
  func.func @transform_5(%arg0: i32) -> (i32, i32) {
    %c0_i32 = arith.constant 0 : i32
    %c0_i32_0 = arith.constant 0 : i32
    %c0_i32_1 = arith.constant 0 : i32
    return %c0_i32, %c0_i32_0 : i32, i32
  }
}

module attributes {stable_mosaic.version = 11 : i64} {
  func.func @_conv_bn_lrelu_fused_kernel(%arg0: i32, %arg1: memref<12x128xbf16, #tpu.memory_space<vmem>>, %arg2: memref<384x64xbf16, #tpu.memory_space<vmem>>, %arg3: memref<1x64xf32, #tpu.memory_space<vmem>>, %arg4: memref<1x64xf32, #tpu.memory_space<vmem>>, %arg5: memref<64x64xf32, #tpu.memory_space<vmem>>, %arg6: memref<8x64xbf16, #tpu.memory_space<vmem>>) attributes {dimension_semantics = [#tpu.dimension_semantics<arbitrary>], iteration_bounds = array<i64: 1>, scalar_prefetch = 0 : i64, scratch_operands = 0 : i64, tpu.core_type = #tpu.core_type<tc>, window_params = [{pipeline_mode = #tpu.pipeline_mode<synchronous>, transform_indices = @transform_0, window_bounds = array<i64: 12, 128>}, {pipeline_mode = #tpu.pipeline_mode<synchronous>, transform_indices = @transform_1, window_bounds = array<i64: 384, 64>}, {pipeline_mode = #tpu.pipeline_mode<synchronous>, transform_indices = @transform_2, window_bounds = array<i64: 1, 64>}, {pipeline_mode = #tpu.pipeline_mode<synchronous>, transform_indices = @transform_3, window_bounds = array<i64: 1, 64>}, {pipeline_mode = #tpu.pipeline_mode<synchronous>, transform_indices = @transform_4, window_bounds = array<i64: 64, 64>}, {pipeline_mode = #tpu.pipeline_mode<synchronous>, transform_indices = @transform_5, window_bounds = array<i64: 8, 64>}]} {
    %c0 = arith.constant 0 : index
    %c0_0 = arith.constant 0 : index
    %0 = vector.load %arg1[%c0, %c0_0] : memref<12x128xbf16, #tpu.memory_space<vmem>>, vector<10x128xbf16>
    %c1 = arith.constant 1 : index
    %c0_1 = arith.constant 0 : index
    %1 = vector.load %arg1[%c1, %c0_1] : memref<12x128xbf16, #tpu.memory_space<vmem>>, vector<10x128xbf16>
    %c2 = arith.constant 2 : index
    %c0_2 = arith.constant 0 : index
    %2 = vector.load %arg1[%c2, %c0_2] : memref<12x128xbf16, #tpu.memory_space<vmem>>, vector<10x128xbf16>
    %3 = tpu.concatenate %0, %1, %2 in 1 : vector<10x128xbf16>, vector<10x128xbf16>, vector<10x128xbf16> -> vector<10x384xbf16>
    %c0_3 = arith.constant 0 : index
    %c0_4 = arith.constant 0 : index
    %4 = vector.load %arg2[%c0_3, %c0_4] : memref<384x64xbf16, #tpu.memory_space<vmem>>, vector<384x64xbf16>
    %cst = arith.constant dense<0.000000e+00> : vector<10x64xf32>
    %5 = tpu.matmul %3, %4, %cst {dimension_numbers = #tpu.dot_dimension_numbers<[1], [0], [0], [1], [0, 0, 1, 1], [], []>} : vector<10x384xbf16>, vector<384x64xbf16>, vector<10x64xf32> -> vector<10x64xf32>
    %cst_5 = arith.constant 0.000000e+00 : f32
    %6 = vector.broadcast %cst_5 : f32 to vector<1x64xf32>
    %cst_6 = arith.constant 0.000000e+00 : f32
    %7 = vector.broadcast %cst_6 : f32 to vector<1x64xf32>
    %8 = vector.extract_strided_slice %5 {offsets = [0, 0], sizes = [4, 64], strides = [1, 1]} : vector<10x64xf32> to vector<4x64xf32>
    %cst_7 = arith.constant dense<0.000000e+00> : vector<64xf32>
    %9 = vector.multi_reduction <add>, %8, %cst_7 [0] : vector<4x64xf32> to vector<64xf32>
    %10 = vector.shape_cast %9 : vector<64xf32> to vector<1x64xf32>
    %11 = arith.addf %6, %10 : vector<1x64xf32>
    %12 = arith.mulf %8, %8 : vector<4x64xf32>
    %cst_8 = arith.constant dense<0.000000e+00> : vector<64xf32>
    %13 = vector.multi_reduction <add>, %12, %cst_8 [0] : vector<4x64xf32> to vector<64xf32>
    %14 = vector.shape_cast %13 : vector<64xf32> to vector<1x64xf32>
    %15 = arith.addf %7, %14 : vector<1x64xf32>
    %16 = vector.extract_strided_slice %5 {offsets = [6, 0], sizes = [4, 64], strides = [1, 1]} : vector<10x64xf32> to vector<4x64xf32>
    %cst_9 = arith.constant dense<0.000000e+00> : vector<64xf32>
    %17 = vector.multi_reduction <add>, %16, %cst_9 [0] : vector<4x64xf32> to vector<64xf32>
    %18 = vector.shape_cast %17 : vector<64xf32> to vector<1x64xf32>
    %19 = arith.addf %11, %18 : vector<1x64xf32>
    %20 = arith.mulf %16, %16 : vector<4x64xf32>
    %cst_10 = arith.constant dense<0.000000e+00> : vector<64xf32>
    %21 = vector.multi_reduction <add>, %20, %cst_10 [0] : vector<4x64xf32> to vector<64xf32>
    %22 = vector.shape_cast %21 : vector<64xf32> to vector<1x64xf32>
    %23 = arith.addf %15, %22 : vector<1x64xf32>
    %c0_11 = arith.constant 0 : index
    %c0_12 = arith.constant 0 : index
    %24 = vector.load %arg3[%c0_11, %c0_12] : memref<1x64xf32, #tpu.memory_space<vmem>>, vector<1x64xf32>
    %c0_13 = arith.constant 0 : index
    %c0_14 = arith.constant 0 : index
    %25 = vector.load %arg4[%c0_13, %c0_14] : memref<1x64xf32, #tpu.memory_space<vmem>>, vector<1x64xf32>
    %c0_15 = arith.constant 0 : index
    %c0_16 = arith.constant 0 : index
    %26 = vector.load %arg5[%c0_15, %c0_16] : memref<64x64xf32, #tpu.memory_space<vmem>>, vector<64x64xf32>
    %cst_17 = arith.constant dense<0.000000e+00> : vector<1x64xf32>
    %27 = tpu.matmul %19, %26, %cst_17 {dimension_numbers = #tpu.dot_dimension_numbers<[1], [0], [0], [1], [0, 0, 1, 1], [], []>} : vector<1x64xf32>, vector<64x64xf32>, vector<1x64xf32> -> vector<1x64xf32>
    %cst_18 = arith.constant 3.125000e-02 : f32
    %28 = vector.broadcast %cst_18 : f32 to vector<1x64xf32>
    %29 = arith.mulf %27, %28 : vector<1x64xf32>
    %cst_19 = arith.constant dense<0.000000e+00> : vector<1x64xf32>
    %30 = tpu.matmul %23, %26, %cst_19 {dimension_numbers = #tpu.dot_dimension_numbers<[1], [0], [0], [1], [0, 0, 1, 1], [], []>} : vector<1x64xf32>, vector<64x64xf32>, vector<1x64xf32> -> vector<1x64xf32>
    %cst_20 = arith.constant 3.125000e-02 : f32
    %31 = vector.broadcast %cst_20 : f32 to vector<1x64xf32>
    %32 = arith.mulf %30, %31 : vector<1x64xf32>
    %33 = arith.mulf %29, %29 : vector<1x64xf32>
    %34 = arith.subf %32, %33 : vector<1x64xf32>
    %cst_21 = arith.constant 0.000000e+00 : f32
    %35 = vector.broadcast %cst_21 : f32 to vector<1x64xf32>
    %36 = arith.maximumf %34, %35 : vector<1x64xf32>
    %cst_22 = arith.constant 9.99999974E-6 : f32
    %37 = vector.broadcast %cst_22 : f32 to vector<1x64xf32>
    %38 = arith.addf %36, %37 : vector<1x64xf32>
    %39 = math.rsqrt %38 : vector<1x64xf32>
    %40 = arith.mulf %24, %39 : vector<1x64xf32>
    %41 = arith.mulf %29, %40 : vector<1x64xf32>
    %42 = arith.subf %25, %41 : vector<1x64xf32>
    %43 = vector.extract_strided_slice %5 {offsets = [0, 0], sizes = [4, 64], strides = [1, 1]} : vector<10x64xf32> to vector<4x64xf32>
    %44 = vector.broadcast %40 : vector<1x64xf32> to vector<4x64xf32>
    %45 = arith.mulf %43, %44 : vector<4x64xf32>
    %46 = vector.broadcast %42 : vector<1x64xf32> to vector<4x64xf32>
    %47 = arith.addf %45, %46 : vector<4x64xf32>
    %cst_23 = arith.constant 0.000000e+00 : f32
    %48 = vector.broadcast %cst_23 : f32 to vector<4x64xf32>
    %49 = arith.cmpf oge, %47, %48 : vector<4x64xf32>
    %cst_24 = arith.constant 5.000000e-02 : f32
    %50 = vector.broadcast %cst_24 : f32 to vector<4x64xf32>
    %51 = arith.mulf %50, %47 : vector<4x64xf32>
    %52 = arith.select %49, %47, %51 : vector<4x64xi1>, vector<4x64xf32>
    %53 = arith.truncf %52 : vector<4x64xf32> to vector<4x64xbf16>
    %c0_25 = arith.constant 0 : index
    %c0_26 = arith.constant 0 : index
    %54 = vector.load %arg6[%c0_25, %c0_26] : memref<8x64xbf16, #tpu.memory_space<vmem>>, vector<4x64xbf16>
    tpu.vector_store %arg6[%c0_25, %c0_26], %53 {strides = array<i32>} : memref<8x64xbf16, #tpu.memory_space<vmem>>, vector<4x64xbf16>,
    %55 = vector.extract_strided_slice %5 {offsets = [6, 0], sizes = [4, 64], strides = [1, 1]} : vector<10x64xf32> to vector<4x64xf32>
    %56 = vector.broadcast %40 : vector<1x64xf32> to vector<4x64xf32>
    %57 = arith.mulf %55, %56 : vector<4x64xf32>
    %58 = vector.broadcast %42 : vector<1x64xf32> to vector<4x64xf32>
    %59 = arith.addf %57, %58 : vector<4x64xf32>
    %cst_27 = arith.constant 0.000000e+00 : f32
    %60 = vector.broadcast %cst_27 : f32 to vector<4x64xf32>
    %61 = arith.cmpf oge, %59, %60 : vector<4x64xf32>
    %cst_28 = arith.constant 5.000000e-02 : f32
    %62 = vector.broadcast %cst_28 : f32 to vector<4x64xf32>
    %63 = arith.mulf %62, %59 : vector<4x64xf32>
    %64 = arith.select %61, %59, %63 : vector<4x64xi1>, vector<4x64xf32>
    %65 = arith.truncf %64 : vector<4x64xf32> to vector<4x64xbf16>
    %c4 = arith.constant 4 : index
    %c0_29 = arith.constant 0 : index
    %66 = vector.load %arg6[%c4, %c0_29] : memref<8x64xbf16, #tpu.memory_space<vmem>>, vector<4x64xbf16>
    tpu.vector_store %arg6[%c4, %c0_29], %65 {strides = array<i32>} : memref<8x64xbf16, #tpu.memory_space<vmem>>, vector<4x64xbf16>,
    return
  }
  func.func @transform_0(%arg0: i32) -> (i32, i32) {
    %c0_i32 = arith.constant 0 : i32
    %c0_i32_0 = arith.constant 0 : i32
    %c0_i32_1 = arith.constant 0 : i32
    return %c0_i32, %c0_i32_0 : i32, i32
  }
  func.func @transform_1(%arg0: i32) -> (i32, i32) {
    %c0_i32 = arith.constant 0 : i32
    %c0_i32_0 = arith.constant 0 : i32
    %c0_i32_1 = arith.constant 0 : i32
    return %c0_i32, %c0_i32_0 : i32, i32
  }
  func.func @transform_2(%arg0: i32) -> (i32, i32) {
    %c0_i32 = arith.constant 0 : i32
    %c0_i32_0 = arith.constant 0 : i32
    %c0_i32_1 = arith.constant 0 : i32
    return %c0_i32, %c0_i32_0 : i32, i32
  }
  func.func @transform_3(%arg0: i32) -> (i32, i32) {
    %c0_i32 = arith.constant 0 : i32
    %c0_i32_0 = arith.constant 0 : i32
    %c0_i32_1 = arith.constant 0 : i32
    return %c0_i32, %c0_i32_0 : i32, i32
  }
  func.func @transform_4(%arg0: i32) -> (i32, i32) {
    %c0_i32 = arith.constant 0 : i32
    %c0_i32_0 = arith.constant 0 : i32
    %c0_i32_1 = arith.constant 0 : i32
    return %c0_i32, %c0_i32_0 : i32, i32
  }
  func.func @transform_5(%arg0: i32) -> (i32, i32) {
    %c0_i32 = arith.constant 0 : i32
    %c0_i32_0 = arith.constant 0 : i32
    %c0_i32_1 = arith.constant 0 : i32
    return %c0_i32, %c0_i32_0 : i32, i32
  }
}

module attributes {stable_mosaic.version = 11 : i64} {
  func.func @_conv_bn_lrelu_fused_kernel(%arg0: i32, %arg1: memref<12x128xbf16, #tpu.memory_space<vmem>>, %arg2: memref<384x128xbf16, #tpu.memory_space<vmem>>, %arg3: memref<1x128xf32, #tpu.memory_space<vmem>>, %arg4: memref<1x128xf32, #tpu.memory_space<vmem>>, %arg5: memref<128x128xf32, #tpu.memory_space<vmem>>, %arg6: memref<8x128xbf16, #tpu.memory_space<vmem>>) attributes {dimension_semantics = [#tpu.dimension_semantics<arbitrary>], iteration_bounds = array<i64: 1>, scalar_prefetch = 0 : i64, scratch_operands = 0 : i64, tpu.core_type = #tpu.core_type<tc>, window_params = [{pipeline_mode = #tpu.pipeline_mode<synchronous>, transform_indices = @transform_0, window_bounds = array<i64: 12, 128>}, {pipeline_mode = #tpu.pipeline_mode<synchronous>, transform_indices = @transform_1, window_bounds = array<i64: 384, 128>}, {pipeline_mode = #tpu.pipeline_mode<synchronous>, transform_indices = @transform_2, window_bounds = array<i64: 1, 128>}, {pipeline_mode = #tpu.pipeline_mode<synchronous>, transform_indices = @transform_3, window_bounds = array<i64: 1, 128>}, {pipeline_mode = #tpu.pipeline_mode<synchronous>, transform_indices = @transform_4, window_bounds = array<i64: 128, 128>}, {pipeline_mode = #tpu.pipeline_mode<synchronous>, transform_indices = @transform_5, window_bounds = array<i64: 8, 128>}]} {
    %c0 = arith.constant 0 : index
    %c0_0 = arith.constant 0 : index
    %0 = vector.load %arg1[%c0, %c0_0] : memref<12x128xbf16, #tpu.memory_space<vmem>>, vector<10x128xbf16>
    %c1 = arith.constant 1 : index
    %c0_1 = arith.constant 0 : index
    %1 = vector.load %arg1[%c1, %c0_1] : memref<12x128xbf16, #tpu.memory_space<vmem>>, vector<10x128xbf16>
    %c2 = arith.constant 2 : index
    %c0_2 = arith.constant 0 : index
    %2 = vector.load %arg1[%c2, %c0_2] : memref<12x128xbf16, #tpu.memory_space<vmem>>, vector<10x128xbf16>
    %3 = tpu.concatenate %0, %1, %2 in 1 : vector<10x128xbf16>, vector<10x128xbf16>, vector<10x128xbf16> -> vector<10x384xbf16>
    %c0_3 = arith.constant 0 : index
    %c0_4 = arith.constant 0 : index
    %4 = vector.load %arg2[%c0_3, %c0_4] : memref<384x128xbf16, #tpu.memory_space<vmem>>, vector<384x128xbf16>
    %cst = arith.constant dense<0.000000e+00> : vector<10x128xf32>
    %5 = tpu.matmul %3, %4, %cst {dimension_numbers = #tpu.dot_dimension_numbers<[1], [0], [0], [1], [0, 0, 1, 1], [], []>} : vector<10x384xbf16>, vector<384x128xbf16>, vector<10x128xf32> -> vector<10x128xf32>
    %cst_5 = arith.constant 0.000000e+00 : f32
    %6 = vector.broadcast %cst_5 : f32 to vector<1x128xf32>
    %cst_6 = arith.constant 0.000000e+00 : f32
    %7 = vector.broadcast %cst_6 : f32 to vector<1x128xf32>
    %8 = vector.extract_strided_slice %5 {offsets = [0, 0], sizes = [4, 128], strides = [1, 1]} : vector<10x128xf32> to vector<4x128xf32>
    %cst_7 = arith.constant dense<0.000000e+00> : vector<128xf32>
    %9 = vector.multi_reduction <add>, %8, %cst_7 [0] : vector<4x128xf32> to vector<128xf32>
    %10 = vector.shape_cast %9 : vector<128xf32> to vector<1x128xf32>
    %11 = arith.addf %6, %10 : vector<1x128xf32>
    %12 = arith.mulf %8, %8 : vector<4x128xf32>
    %cst_8 = arith.constant dense<0.000000e+00> : vector<128xf32>
    %13 = vector.multi_reduction <add>, %12, %cst_8 [0] : vector<4x128xf32> to vector<128xf32>
    %14 = vector.shape_cast %13 : vector<128xf32> to vector<1x128xf32>
    %15 = arith.addf %7, %14 : vector<1x128xf32>
    %16 = vector.extract_strided_slice %5 {offsets = [6, 0], sizes = [4, 128], strides = [1, 1]} : vector<10x128xf32> to vector<4x128xf32>
    %cst_9 = arith.constant dense<0.000000e+00> : vector<128xf32>
    %17 = vector.multi_reduction <add>, %16, %cst_9 [0] : vector<4x128xf32> to vector<128xf32>
    %18 = vector.shape_cast %17 : vector<128xf32> to vector<1x128xf32>
    %19 = arith.addf %11, %18 : vector<1x128xf32>
    %20 = arith.mulf %16, %16 : vector<4x128xf32>
    %cst_10 = arith.constant dense<0.000000e+00> : vector<128xf32>
    %21 = vector.multi_reduction <add>, %20, %cst_10 [0] : vector<4x128xf32> to vector<128xf32>
    %22 = vector.shape_cast %21 : vector<128xf32> to vector<1x128xf32>
    %23 = arith.addf %15, %22 : vector<1x128xf32>
    %c0_11 = arith.constant 0 : index
    %c0_12 = arith.constant 0 : index
    %24 = vector.load %arg3[%c0_11, %c0_12] : memref<1x128xf32, #tpu.memory_space<vmem>>, vector<1x128xf32>
    %c0_13 = arith.constant 0 : index
    %c0_14 = arith.constant 0 : index
    %25 = vector.load %arg4[%c0_13, %c0_14] : memref<1x128xf32, #tpu.memory_space<vmem>>, vector<1x128xf32>
    %c0_15 = arith.constant 0 : index
    %c0_16 = arith.constant 0 : index
    %26 = vector.load %arg5[%c0_15, %c0_16] : memref<128x128xf32, #tpu.memory_space<vmem>>, vector<128x128xf32>
    %cst_17 = arith.constant dense<0.000000e+00> : vector<1x128xf32>
    %27 = tpu.matmul %19, %26, %cst_17 {dimension_numbers = #tpu.dot_dimension_numbers<[1], [0], [0], [1], [0, 0, 1, 1], [], []>} : vector<1x128xf32>, vector<128x128xf32>, vector<1x128xf32> -> vector<1x128xf32>
    %cst_18 = arith.constant 7.812500e-03 : f32
    %28 = vector.broadcast %cst_18 : f32 to vector<1x128xf32>
    %29 = arith.mulf %27, %28 : vector<1x128xf32>
    %cst_19 = arith.constant dense<0.000000e+00> : vector<1x128xf32>
    %30 = tpu.matmul %23, %26, %cst_19 {dimension_numbers = #tpu.dot_dimension_numbers<[1], [0], [0], [1], [0, 0, 1, 1], [], []>} : vector<1x128xf32>, vector<128x128xf32>, vector<1x128xf32> -> vector<1x128xf32>
    %cst_20 = arith.constant 7.812500e-03 : f32
    %31 = vector.broadcast %cst_20 : f32 to vector<1x128xf32>
    %32 = arith.mulf %30, %31 : vector<1x128xf32>
    %33 = arith.mulf %29, %29 : vector<1x128xf32>
    %34 = arith.subf %32, %33 : vector<1x128xf32>
    %cst_21 = arith.constant 0.000000e+00 : f32
    %35 = vector.broadcast %cst_21 : f32 to vector<1x128xf32>
    %36 = arith.maximumf %34, %35 : vector<1x128xf32>
    %cst_22 = arith.constant 9.99999974E-6 : f32
    %37 = vector.broadcast %cst_22 : f32 to vector<1x128xf32>
    %38 = arith.addf %36, %37 : vector<1x128xf32>
    %39 = math.rsqrt %38 : vector<1x128xf32>
    %40 = arith.mulf %24, %39 : vector<1x128xf32>
    %41 = arith.mulf %29, %40 : vector<1x128xf32>
    %42 = arith.subf %25, %41 : vector<1x128xf32>
    %43 = vector.extract_strided_slice %5 {offsets = [0, 0], sizes = [4, 128], strides = [1, 1]} : vector<10x128xf32> to vector<4x128xf32>
    %44 = vector.broadcast %40 : vector<1x128xf32> to vector<4x128xf32>
    %45 = arith.mulf %43, %44 : vector<4x128xf32>
    %46 = vector.broadcast %42 : vector<1x128xf32> to vector<4x128xf32>
    %47 = arith.addf %45, %46 : vector<4x128xf32>
    %cst_23 = arith.constant 0.000000e+00 : f32
    %48 = vector.broadcast %cst_23 : f32 to vector<4x128xf32>
    %49 = arith.cmpf oge, %47, %48 : vector<4x128xf32>
    %cst_24 = arith.constant 5.000000e-02 : f32
    %50 = vector.broadcast %cst_24 : f32 to vector<4x128xf32>
    %51 = arith.mulf %50, %47 : vector<4x128xf32>
    %52 = arith.select %49, %47, %51 : vector<4x128xi1>, vector<4x128xf32>
    %53 = arith.truncf %52 : vector<4x128xf32> to vector<4x128xbf16>
    %c0_25 = arith.constant 0 : index
    %c0_26 = arith.constant 0 : index
    %54 = vector.load %arg6[%c0_25, %c0_26] : memref<8x128xbf16, #tpu.memory_space<vmem>>, vector<4x128xbf16>
    tpu.vector_store %arg6[%c0_25, %c0_26], %53 {strides = array<i32>} : memref<8x128xbf16, #tpu.memory_space<vmem>>, vector<4x128xbf16>,
    %55 = vector.extract_strided_slice %5 {offsets = [6, 0], sizes = [4, 128], strides = [1, 1]} : vector<10x128xf32> to vector<4x128xf32>
    %56 = vector.broadcast %40 : vector<1x128xf32> to vector<4x128xf32>
    %57 = arith.mulf %55, %56 : vector<4x128xf32>
    %58 = vector.broadcast %42 : vector<1x128xf32> to vector<4x128xf32>
    %59 = arith.addf %57, %58 : vector<4x128xf32>
    %cst_27 = arith.constant 0.000000e+00 : f32
    %60 = vector.broadcast %cst_27 : f32 to vector<4x128xf32>
    %61 = arith.cmpf oge, %59, %60 : vector<4x128xf32>
    %cst_28 = arith.constant 5.000000e-02 : f32
    %62 = vector.broadcast %cst_28 : f32 to vector<4x128xf32>
    %63 = arith.mulf %62, %59 : vector<4x128xf32>
    %64 = arith.select %61, %59, %63 : vector<4x128xi1>, vector<4x128xf32>
    %65 = arith.truncf %64 : vector<4x128xf32> to vector<4x128xbf16>
    %c4 = arith.constant 4 : index
    %c0_29 = arith.constant 0 : index
    %66 = vector.load %arg6[%c4, %c0_29] : memref<8x128xbf16, #tpu.memory_space<vmem>>, vector<4x128xbf16>
    tpu.vector_store %arg6[%c4, %c0_29], %65 {strides = array<i32>} : memref<8x128xbf16, #tpu.memory_space<vmem>>, vector<4x128xbf16>,
    return
  }
  func.func @transform_0(%arg0: i32) -> (i32, i32) {
    %c0_i32 = arith.constant 0 : i32
    %c0_i32_0 = arith.constant 0 : i32
    %c0_i32_1 = arith.constant 0 : i32
    return %c0_i32, %c0_i32_0 : i32, i32
  }
  func.func @transform_1(%arg0: i32) -> (i32, i32) {
    %c0_i32 = arith.constant 0 : i32
    %c0_i32_0 = arith.constant 0 : i32
    %c0_i32_1 = arith.constant 0 : i32
    return %c0_i32, %c0_i32_0 : i32, i32
  }
  func.func @transform_2(%arg0: i32) -> (i32, i32) {
    %c0_i32 = arith.constant 0 : i32
    %c0_i32_0 = arith.constant 0 : i32
    %c0_i32_1 = arith.constant 0 : i32
    return %c0_i32, %c0_i32_0 : i32, i32
  }
  func.func @transform_3(%arg0: i32) -> (i32, i32) {
    %c0_i32 = arith.constant 0 : i32
    %c0_i32_0 = arith.constant 0 : i32
    %c0_i32_1 = arith.constant 0 : i32
    return %c0_i32, %c0_i32_0 : i32, i32
  }
  func.func @transform_4(%arg0: i32) -> (i32, i32) {
    %c0_i32 = arith.constant 0 : i32
    %c0_i32_0 = arith.constant 0 : i32
    %c0_i32_1 = arith.constant 0 : i32
    return %c0_i32, %c0_i32_0 : i32, i32
  }
  func.func @transform_5(%arg0: i32) -> (i32, i32) {
    %c0_i32 = arith.constant 0 : i32
    %c0_i32_0 = arith.constant 0 : i32
    %c0_i32_1 = arith.constant 0 : i32
    return %c0_i32, %c0_i32_0 : i32, i32
  }
}

module attributes {stable_mosaic.version = 11 : i64} {
  func.func @_conv_tanh_kernel(%arg0: i32, %arg1: memref<20x128xbf16, #tpu.memory_space<vmem>>, %arg2: memref<384x32xbf16, #tpu.memory_space<vmem>>, %arg3: memref<16x32xf32, #tpu.memory_space<vmem>>) attributes {dimension_semantics = [#tpu.dimension_semantics<parallel>], iteration_bounds = array<i64: 1>, scalar_prefetch = 0 : i64, scratch_operands = 0 : i64, tpu.core_type = #tpu.core_type<tc>, window_params = [{transform_indices = @transform_0, window_bounds = array<i64: 20, 128>}, {pipeline_mode = #tpu.pipeline_mode<synchronous>, transform_indices = @transform_1, window_bounds = array<i64: 384, 32>}, {transform_indices = @transform_2, window_bounds = array<i64: 16, 32>}]} {
    %c0 = arith.constant 0 : index
    %c0_0 = arith.constant 0 : index
    %0 = vector.load %arg1[%c0, %c0_0] : memref<20x128xbf16, #tpu.memory_space<vmem>>, vector<18x128xbf16>
    %c1 = arith.constant 1 : index
    %c0_1 = arith.constant 0 : index
    %1 = vector.load %arg1[%c1, %c0_1] : memref<20x128xbf16, #tpu.memory_space<vmem>>, vector<18x128xbf16>
    %c2 = arith.constant 2 : index
    %c0_2 = arith.constant 0 : index
    %2 = vector.load %arg1[%c2, %c0_2] : memref<20x128xbf16, #tpu.memory_space<vmem>>, vector<18x128xbf16>
    %3 = tpu.concatenate %0, %1, %2 in 1 : vector<18x128xbf16>, vector<18x128xbf16>, vector<18x128xbf16> -> vector<18x384xbf16>
    %c0_3 = arith.constant 0 : index
    %c0_4 = arith.constant 0 : index
    %4 = vector.load %arg2[%c0_3, %c0_4] : memref<384x32xbf16, #tpu.memory_space<vmem>>, vector<384x32xbf16>
    %cst = arith.constant dense<0.000000e+00> : vector<18x32xf32>
    %5 = tpu.matmul %3, %4, %cst {dimension_numbers = #tpu.dot_dimension_numbers<[1], [0], [0], [1], [0, 0, 1, 1], [], []>} : vector<18x384xbf16>, vector<384x32xbf16>, vector<18x32xf32> -> vector<18x32xf32>
    %6 = vector.extract_strided_slice %5 {offsets = [0, 0], sizes = [8, 32], strides = [1, 1]} : vector<18x32xf32> to vector<8x32xf32>
    %7 = math.tanh %6 : vector<8x32xf32>
    %c0_5 = arith.constant 0 : index
    %c0_6 = arith.constant 0 : index
    %8 = vector.load %arg3[%c0_5, %c0_6] : memref<16x32xf32, #tpu.memory_space<vmem>>, vector<8x32xf32>
    tpu.vector_store %arg3[%c0_5, %c0_6], %7 {strides = array<i32>} : memref<16x32xf32, #tpu.memory_space<vmem>>, vector<8x32xf32>,
    %9 = vector.extract_strided_slice %5 {offsets = [10, 0], sizes = [8, 32], strides = [1, 1]} : vector<18x32xf32> to vector<8x32xf32>
    %10 = math.tanh %9 : vector<8x32xf32>
    %c8 = arith.constant 8 : index
    %c0_7 = arith.constant 0 : index
    %11 = vector.load %arg3[%c8, %c0_7] : memref<16x32xf32, #tpu.memory_space<vmem>>, vector<8x32xf32>
    tpu.vector_store %arg3[%c8, %c0_7], %10 {strides = array<i32>} : memref<16x32xf32, #tpu.memory_space<vmem>>, vector<8x32xf32>,
    return
  }
  func.func @transform_0(%arg0: i32) -> (i32, i32) {
    %c0_i32 = arith.constant 0 : i32
    %c0_i32_0 = arith.constant 0 : i32
    return %arg0, %c0_i32 : i32, i32
  }
  func.func @transform_1(%arg0: i32) -> (i32, i32) {
    %c0_i32 = arith.constant 0 : i32
    %c0_i32_0 = arith.constant 0 : i32
    %c0_i32_1 = arith.constant 0 : i32
    return %c0_i32, %c0_i32_0 : i32, i32
  }
  func.func @transform_2(%arg0: i32) -> (i32, i32) {
    %c0_i32 = arith.constant 0 : i32
    %c0_i32_0 = arith.constant 0 : i32
    return %arg0, %c0_i32 : i32, i32
  }
}

</mosaic_0001>

<bundles_post_ra>
// kernel: g11_forward.6
= control target key start
LH: loop header
LB: loop body
LE: loop exit
PB: predicated region body
PF: predicated region fallthrough
CT: control target
= control target key end

     0   :  { %vm34_vm0 = vsmask.f32 7424  ;;  %v631_v26 = vmov 0.0   ;;  %vm632_vm1 = vmmov 0   ;;  %vm227_vm2 = vcmask 523264   ;;  %s831_s1 = inlined_call_operand.vmem [shape: bf16[256,64], index: 1, kind: input, shape index: {}]   ;;  %s832_s0 = inlined_call_operand.vmem [shape: bf16[18,128], index: 0, kind: input, shape index: {}]   ;;  %s833_s4 = inlined_call_operand.vmem [shape: f32[64,64], index: 4, kind: input, shape index: {}]   ;;  %s834_s2 = inlined_call_operand.vmem [shape: f32[1,64], index: 2, kind: input, shape index: {}]   ;;  %s835_s3 = inlined_call_operand.vmem [shape: f32[1,64], index: 3, kind: input, shape index: {}]   ;;  %s836_s5 = inlined_call_operand.vmem [shape: bf16[16,64], index: 5, kind: output, shape index: {}]  }
   0x1   :  { %v611_v0 = vld [vmem:[%s831_s1 + $0x78] sm:$0xff]   ;;  %v613_v2 = vld [vmem:[%s831_s1 + $0x70] sm:$0xff]   ;;  %v615_v4 = vld [vmem:[%s831_s1 + $0x68] sm:$0xff]   ;;  %571 = vmatprep.subr.mxu1 %v631_v26  ;;  %587 = vmatprep.mubr.msk.f32.mxu1 %vm632_vm1, %v631_v26  ;;  %vm247_vm3 = vcmask 1046528   ;;  %vm460_vm7 = vcmask 519168  }
   0x2   :  { %v612_v1 = vld [vmem:[%s831_s1 + $0x38] sm:$0xff]   ;;  %525 = vmatprep.subr.bf16.mxu0 %v611_v0  ;;  %v614_v3 = vld [vmem:[%s831_s1 + $0x30] sm:$0xff]   ;;  %v616_v5 = vld [vmem:[%s831_s1 + $0x28] sm:$0xff]   ;;  %vm478_vm8 = vsmask.f32 3328 }
   0x3   :  { %526 = vmatpush3.bf16.msra.mxu0 %v612_v1  ;;  %v617_v6 = vld [vmem:[%s831_s1 + $0x60] sm:$0xff]   ;;  %v619_v8 = vld [vmem:[%s831_s1 + $0x58] sm:$0xff]   ;;  %v621_v10 = vld [vmem:[%s831_s1 + $0x50] sm:$0xff]   ;;  %vm479_vm9 = vsmask.f32 7440 }
   0x4   :  { %527 = vmatprep.subr.bf16.mxu0 %v613_v2  ;;  %v618_v7 = vld [vmem:[%s831_s1 + $0x20] sm:$0xff]   ;;  %v620_v9 = vld [vmem:[%s831_s1 + $0x18] sm:$0xff]   ;;  %v628_v12 = vld [vmem:[%s832_s0 + $0x8] ss:$0 sps:$4 sm:$0x11]  }
   0x5   :  { %v627_v11 = vld [vmem:[%s832_s0] sm:$0xff]   ;;  %v622_v13 = vld [vmem:[%s831_s1 + $0x10] sm:$0xff]   ;;  %v43_v16 = vshll.u32 %v628_v12, 16  ;;  %v623_v17 = vld [vmem:[%s831_s1 + $0x48] sm:$0xff]   ;;  %v47_v25 = vshrl.u32 %v628_v12, 16 }
   0x6   :  { %v36_v14 = vshrl.u32 %v627_v11, 16  ;;  %v38_v15 = vshll.u32 %v627_v11, 16  ;;  %v624_v20 = vld [vmem:[%s831_s1 + $0x8] sm:$0xff]   ;;  %v625_v22 = vld [vmem:[%s831_s1 + $0x40] sm:$0xff]   ;;  %v721_v27 = vld [vmem:[%s833_s4 + $0x38] sm:$0xff] }
   0x7   :  { %528 = vmatpush3.bf16.msra.mxu0 %v614_v3  ;;  %v45_v19 = vrot.slane %v43_v16, 1  ;;  %v626_v24 = vld [vmem:[%s831_s1] sm:$0xff]   ;;  %572 = vmatpush3.msra.mxu1 %v721_v27  ;;  %v728_v28 = vld [vmem:[%s833_s4 + $0x30] sm:$0xff]  ;;  %v735_v29 = vld [vmem:[%s833_s4 + $0x28] sm:$0xff] }
   0x8   :  { %529 = vmatprep.subr.bf16.mxu0 %v615_v4  ;;  %v40_v18 = vrot.slane %v38_v15, 1  ;;  %573 = vmatprep.subr.mxu1 %v631_v26  ;;  %v742_v30 = vld [vmem:[%s833_s4 + $0x20] sm:$0xff]  ;;  %v749_v31 = vld [vmem:[%s833_s4 + $0x18] sm:$0xff]  ;;  %v756_v32 = vld [vmem:[%s833_s4 + $0x10] sm:$0xff] }
   0x9   :  { %574 = vmatpush3.msra.mxu1 %v728_v28  ;;  %v762_v33 = vld [vmem:[%s833_s4 + $0x8] sm:$0xff]  ;;  %v768_v34 = vld [vmem:[%s833_s4] sm:$0xff]  ;;  %vm480_vm10 = vmor %vm478_vm8, %vm479_vm9 }
   0xa   :  { %v41_v21 = vor.u32 %v40_v18, %v36_v14  ;;  %575 = vmatprep.subr.mxu1 %v631_v26 }
   0xb   :  { %530 = vmatpush3.bf16.msra.mxu0 %v616_v5  ;;  %576 = vmatpush3.msra.mxu1 %v735_v29 }
   0xc   :  { %531 = vmatprep.subr.bf16.mxu0 %v617_v6  ;;  %v46_v23 = vsel %vm34_vm0, %v41_v21, %v45_v19  ;;  %577 = vmatprep.subr.mxu1 %v631_v26 }
   0xd   :  { %211 = vmatprep.mubr.bf16.mxu0 %v46_v23  ;;  %578 = vmatpush3.msra.mxu1 %v742_v30 }
   0xe   :  { %579 = vmatprep.subr.mxu1 %v631_v26 }
   0xf   :  { %532 = vmatpush3.bf16.msra.mxu0 %v618_v7  ;;  %580 = vmatpush3.msra.mxu1 %v749_v31 }
  0x10   :  { %533 = vmatprep.subr.bf16.mxu0 %v619_v8  ;;  %581 = vmatprep.subr.mxu1 %v631_v26 }
  0x11   :  { %582 = vmatpush3.msra.mxu1 %v756_v32 }
  0x12   :  { %583 = vmatprep.subr.mxu1 %v631_v26 }
  0x13   :  { %534 = vmatpush3.bf16.msra.mxu0 %v620_v9  ;;  %584 = vmatpush3.msra.mxu1 %v762_v33 }
  0x14   :  { %535 = vmatprep.subr.bf16.mxu0 %v621_v10  ;;  %585 = vmatprep.subr.mxu1 %v631_v26 }
  0x15   :  { %586 = vmatpush3.msra.mxu1 %v768_v34 }
  0x16   :  { %590 = vmatprep.subr.mxu1 %v631_v26 }
  0x17   :  { %536 = vmatpush3.bf16.msra.mxu0 %v622_v13 }
  0x18   :  { %537 = vmatprep.subr.bf16.mxu0 %v623_v17 }
  0x1b   :  { %538 = vmatpush3.bf16.msra.mxu0 %v624_v20 }
  0x1c   :  { %539 = vmatprep.subr.bf16.mxu0 %v625_v22 }
  0x1f   :  { %540 = vmatpush3.bf16.msra.mxu0 %v626_v24 }
  0x22   :  { %212 = vmatmul.mubr.bf16.vlgmr.msra.gmra.mxu0 %v627_v11 }
  0x23   :  { %219 = vmatprep.mubr.bf16.mxu0 %v47_v25 }
  0x2a   :  { %220 = vmatmul.mubr.bf16.gmra.mxu0 %v628_v12 }
  0xe2   :  { %v541_v35 = vpop.f32.mrf.mxu0 }
  0xe4   :  { %v542_v36 = vpop.f32.mrf.mxu0 }
  0xe5   :  { %v776_v37 = vadd.f32 %v542_v36, %v541_v35 }
  0xe6   :  { %v544_v38 = vpop.f32.mrf.mxu0 }
  0xe7   :  { %v228_v39 = vsel %vm227_vm2, %v776_v37, 0.0  ;;  %v236_v57 = vmul.f32 %v776_v37, %v776_v37 }
  0xe8   :  { %v545_v40 = vpop.f32.mrf.mxu0  ;;  %v229_v41 = vrot.slane %v228_v39, 4 }
  0xe9   :  { %v780_v42 = vadd.f32 %v545_v40, %v544_v38  ;;  %v237_v0 = vsel %vm227_vm2, %v236_v57, 0.0  ;;  %v277_v38 = vld [vmem:[%s835_s3] sm:$0x1] }
  0xea   :  { %v547_v43 = vpop.f32.mrf.mxu0  ;;  %v230_v45 = vadd.f32 %v229_v41, %v228_v39  ;;  %v238_v4 = vrot.slane %v237_v0, 4 }
  0xeb   :  { %v260_v46 = vmul.f32 %v780_v42, %v780_v42  ;;  %v248_v49 = vrot.slane %v780_v42, 1 }
  0xec   :  { %v548_v44 = vpop.f32.mrf.mxu0  ;;  %v231_v53 = vrot.slane %v230_v45, 2  ;;  %v239_v8 = vadd.f32 %v238_v4, %v237_v0 }
  0xed   :  { %v784_v47 = vadd.f32 %v548_v44, %v547_v43  ;;  %v264_v54 = vrot.slane %v260_v46, 1 }
  0xee   :  { %v550_v48 = vpop.f32.mrf.mxu0  ;;  %v232_v62 = vadd.f32 %v231_v53, %v230_v45  ;;  %v240_v13 = vrot.slane %v239_v8, 2 }
  0xef   :  { %v249_v50 = vrot.slane %v784_v47, 1  ;;  %v261_v51 = vmul.f32 %v784_v47, %v784_v47 }
  0xf0   :  { %v551_v52 = vpop.f32.mrf.mxu0  ;;  %v233_v3 = vrot.slane %v232_v62, 1  ;;  %v241_v15 = vadd.f32 %v240_v13, %v239_v8 }
  0xf1   :  { %v250_v55 = vsel %vm247_vm3, %v248_v49, %v249_v50  ;;  %v265_v56 = vrot.slane %v261_v51, 1 }
  0xf2   :  { %v252_v58 = vsel %vm227_vm2, %v250_v55, 0.0  ;;  %v234_v9 = vadd.f32 %v233_v3, %v232_v62  ;;  %v242_v17 = vrot.slane %v241_v15, 1 }
  0xf3   :  { %v253_v59 = vrot.slane %v252_v58, 4  ;;  %v266_v60 = vsel %vm247_vm3, %v264_v54, %v265_v56 }
  0xf4   :  { %v268_v61 = vsel %vm227_vm2, %v266_v60, 0.0  ;;  %v243_v19 = vadd.f32 %v242_v17, %v241_v15 }
  0xf5   :  { %v254_v63 = vadd.f32 %v253_v59, %v252_v58  ;;  %v269_v1 = vrot.slane %v268_v61, 4 }
  0xf7   :  { %v255_v2 = vrot.slane %v254_v63, 2  ;;  %v270_v6 = vadd.f32 %v269_v1, %v268_v61 }
  0xf9   :  { %v256_v5 = vadd.f32 %v255_v2, %v254_v63  ;;  %v271_v11 = vrot.slane %v270_v6, 2 }
  0xfb   :  { %v257_v7 = vrot.slane %v256_v5, 1  ;;  %v272_v14 = vadd.f32 %v271_v11, %v270_v6 }
  0xfd   :  { %v258_v10 = vadd.f32 %v257_v7, %v256_v5  ;;  %v273_v16 = vrot.slane %v272_v14, 1 }
  0xff   :  { %v259_v12 = vadd.f32 %v258_v10, %v234_v9  ;;  %v274_v18 = vadd.f32 %v273_v16, %v272_v14 }
 0x101   :  { %588 = vmatmul.mubr.msk.f32.vlgmr.msra.gmra.mxu1 %vm227_vm2, %v259_v12  ;;  %v275_v20 = vadd.f32 %v274_v18, %v243_v19 }
 0x102   :  { %591 = vmatpush3.msra.mxu1 %v721_v27  ;;  %606 = vmatprep.mubr.msk.f32.mxu1 %vm632_vm1, %v631_v26 }
 0x103   :  { %592 = vmatprep.subr.mxu1 %v631_v26 }
 0x104   :  { %593 = vmatpush3.msra.mxu1 %v728_v28 }
 0x105   :  { %594 = vmatprep.subr.mxu1 %v631_v26 }
 0x106   :  { %595 = vmatpush3.msra.mxu1 %v735_v29 }
 0x107   :  { %596 = vmatprep.subr.mxu1 %v631_v26 }
 0x108   :  { %597 = vmatpush3.msra.mxu1 %v742_v30 }
 0x109   :  { %598 = vmatprep.subr.mxu1 %v631_v26 }
 0x10a   :  { %599 = vmatpush3.msra.mxu1 %v749_v31 }
 0x10b   :  { %600 = vmatprep.subr.mxu1 %v631_v26 }
 0x10c   :  { %601 = vmatpush3.msra.mxu1 %v756_v32  ;;  %v443_v32 = vlaneseq }
 0x10d   :  { %602 = vmatprep.subr.mxu1 %v631_v26 }
 0x10e   :  { %603 = vmatpush3.msra.mxu1 %v762_v33  ;;  %v444_v33 = vshrl.u32 %v443_v32, 7 }
 0x10f   :  { %604 = vmatprep.subr.mxu1 %v631_v26  ;;  %v276_v26 = vld [vmem:[%s834_s2] sm:$0x1] }
 0x110   :  { %605 = vmatpush3.msra.mxu1 %v768_v34  ;;  %v445_v34 = vsub.s32 0, %v444_v33 }
 0x111   :  { %607 = vmatmul.mubr.msk.f32.vlgmr.msra.gmra.mxu1 %vm227_vm2, %v275_v20 }
 0x1c1   :  { %v355_v21 = vpop.f32.mrf.mxu1 }
 0x1c2   :  { %v359_v23 = vmul.f32 0.0078125, %v355_v21 }
 0x1c3   :  { %v589_v22 = vpop.f32.mrf.mxu1 }
 0x1c4   :  { %v434_v25 = vmul.f32 %v359_v23, %v359_v23 }
 0x1d1   :  { %v429_v24 = vpop.f32.mrf.mxu1 }
 0x1d2   :  { %v433_v27 = vmul.f32 0.0078125, %v429_v24 }
 0x1d3   :  { %v608_v28 = vpop.f32.mrf.mxu1 }
 0x1d4   :  { %v435_v29 = vsub.f32 %v433_v27, %v434_v25 }
 0x1d6   :  { %v436_v30 = vmax.f32 %v435_v29, 0.0 }
 0x1d8   :  { %v437_v31 = vadd.f32 1e-05, %v436_v30 }
 0x1da   :  { %629 = vrsqrt.f32 %v437_v31 }
 0x1e7   :  { %v630_v35 = vpop.eup %629 }
 0x1e8   :  { %v439_v36 = vmul.f32 %v630_v35, %v276_v26 }
 0x1ea   :  { %v440_v39 = vmul.f32 %v439_v36, %v359_v23  ;;  %v446_v40 = vrot.slane %v439_v36, %v445_v34 }
 0x1ec   :  { %v441_v41 = vsub.f32 %v277_v38, %v440_v39  ;;  %v448_v43 = vmul.f32 %v776_v37, %v446_v40  ;;  %v462_v45 = vmul.f32 %v780_v42, %v446_v40  ;;  %v463_v46 = vmul.f32 %v784_v47, %v446_v40 }
 0x1ee   :  { %v453_v44 = vrot.slane %v441_v41, %v445_v34 }
 0x1f0   :  { %v455_v48 = vadd.f32 %v453_v44, %v448_v43  ;;  %v464_v49 = vadd.f32 %v462_v45, %v453_v44  ;;  %v465_v50 = vadd.f32 %v463_v46, %v453_v44 }
 0x1f2   :  { %vm456_vm4 = vcmp.ge.f32.partialorder %v455_v48, 0.0  ;;  %v457_v51 = vmul.f32 0.05, %v455_v48  ;;  %vm466_vm5 = vcmp.ge.f32.partialorder %v464_v49, 0.0  ;;  %vm467_vm6 = vcmp.ge.f32.partialorder %v465_v50, 0.0 }
 0x1f3   :  { %v468_v52 = vmul.f32 0.05, %v464_v49  ;;  %v469_v53 = vmul.f32 0.05, %v465_v50 }
 0x1f4   :  { %v458_v54 = vsel %vm456_vm4, %v455_v48, %v457_v51 }
 0x1f5   :  { %v459_v55 = vpack.c.bf16 %v458_v54, %v458_v54  ;;  %v470_v56 = vsel %vm466_vm5, %v464_v49, %v468_v52  ;;  %v471_v57 = vsel %vm467_vm6, %v465_v50, %v469_v53 }
 0x1f6   :  { %v523_v37 = vpack.c.bf16 %v470_v56, %v470_v56  ;;  %v524_v58 = vpack.c.bf16 %v471_v57, %v471_v57 }
 0x1f7   :  { %461 = vst.msk [vmem:[%s836_s5] sm:$0xf] %vm460_vm7, %v459_v55 }
 0x1f8   :  { %v482_v42 = vshrl.u32 %v523_v37, 16  ;;  %v485_v47 = vshll.u32 %v523_v37, 16  ;;  %v491_v61 = vshll.u32 %v524_v58, 16 }
 0x1fa   :  { %v484_v59 = vrot.slane %v482_v42, 4  ;;  %v487_v60 = vrot.slane %v485_v47, 5  ;;  %v493_v0 = vrot.slane %v491_v61, 5 }
 0x1fc   :  { %v488_v62 = vor.u32 %v487_v60, %v484_v59 }
 0x1fe   :  { %v489_v63 = vrot.slane %v488_v62, 4 }
 0x200   :  { %v494_v1 = vsel %vm480_vm10, %v489_v63, %v493_v0 }
 0x201   :  { %496 = vst.msk [vmem:[%s836_s5 + $0x4] sm:$0xf] %vm460_vm7, %v494_v1 }

// kernel: g11_forward.7
= control target key start
LH: loop header
LB: loop body
LE: loop exit
PB: predicated region body
PF: predicated region fallthrough
CT: control target
= control target key end

     0   :  { %v836_v42 = vmov 0.0   ;;  %vm837_vm0 = vmmov 0   ;;  %vm387_vm1 = vcmask 519168   ;;  %vm407_vm2 = vcmask 1042432   ;;  %s1023_s1 = inlined_call_operand.vmem [shape: bf16[512,64], index: 1, kind: input, shape index: {}]   ;;  %s1024_s0 = inlined_call_operand.vmem [shape: bf16[10,256], index: 0, kind: input, shape index: {}]   ;;  %s1025_s4 = inlined_call_operand.vmem [shape: f32[64,64], index: 4, kind: input, shape index: {}]   ;;  %s1026_s2 = inlined_call_operand.vmem [shape: f32[1,64], index: 2, kind: input, shape index: {}]   ;;  %s1027_s3 = inlined_call_operand.vmem [shape: f32[1,64], index: 3, kind: input, shape index: {}]   ;;  %s1028_s5 = inlined_call_operand.vmem [shape: bf16[8,64], index: 5, kind: output, shape index: {}]  }
   0x1   :  { %v799_v0 = vld [vmem:[%s1023_s1 + $0x78] sm:$0xff]   ;;  %v803_v4 = vld [vmem:[%s1023_s1 + $0x70] sm:$0xff]   ;;  %v807_v8 = vld [vmem:[%s1023_s1 + $0x68] sm:$0xff]   ;;  %vm445_vm3 = vcmask 523264   ;;  %vm620_vm6 = vcmask 517120   ;;  %vm651_vm10 = vcmask 519170  }
   0x2   :  { %v800_v1 = vld [vmem:[%s1023_s1 + $0xf8] sm:$0xff]   ;;  %697 = vmatprep.subr.bf16.mxu0 %v799_v0  ;;  %v804_v5 = vld [vmem:[%s1023_s1 + $0xf0] sm:$0xff]   ;;  %v808_v9 = vld [vmem:[%s1023_s1 + $0xe8] sm:$0xff]   ;;  %vm633_vm7 = vsmask.f32 3328 }
   0x3   :  { %v801_v2 = vld [vmem:[%s1023_s1 + $0x38] sm:$0xff]   ;;  %719 = vmatprep.subr.bf16.mxu1 %v800_v1  ;;  %v805_v6 = vld [vmem:[%s1023_s1 + $0x30] sm:$0xff]   ;;  %v809_v10 = vld [vmem:[%s1023_s1 + $0x28] sm:$0xff]   ;;  %vm634_vm8 = vsmask.f32 7440 }
   0x4   :  { %v802_v3 = vld [vmem:[%s1023_s1 + $0xb8] sm:$0xff]   ;;  %698 = vmatpush3.bf16.msra.mxu0 %v801_v2  ;;  %v806_v7 = vld [vmem:[%s1023_s1 + $0xb0] sm:$0xff]   ;;  %v810_v11 = vld [vmem:[%s1023_s1 + $0xa8] sm:$0xff]  }
   0x5   :  { %720 = vmatpush3.bf16.msra.mxu1 %v802_v3  ;;  %699 = vmatprep.subr.bf16.mxu0 %v803_v4  ;;  %v811_v12 = vld [vmem:[%s1023_s1 + $0x60] sm:$0xff]   ;;  %v815_v16 = vld [vmem:[%s1023_s1 + $0x58] sm:$0xff]   ;;  %v819_v20 = vld [vmem:[%s1023_s1 + $0x50] sm:$0xff]  }
   0x6   :  { %721 = vmatprep.subr.bf16.mxu1 %v804_v5  ;;  %v812_v13 = vld [vmem:[%s1023_s1 + $0xe0] sm:$0xff]   ;;  %v816_v17 = vld [vmem:[%s1023_s1 + $0xd8] sm:$0xff]   ;;  %v820_v21 = vld [vmem:[%s1023_s1 + $0xd0] sm:$0xff]  }
   0x7   :  { %v813_v14 = vld [vmem:[%s1023_s1 + $0x20] sm:$0xff]   ;;  %v817_v18 = vld [vmem:[%s1023_s1 + $0x18] sm:$0xff]   ;;  %v821_v22 = vld [vmem:[%s1023_s1 + $0x10] sm:$0xff]  }
   0x8   :  { %700 = vmatpush3.bf16.msra.mxu0 %v805_v6  ;;  %v814_v15 = vld [vmem:[%s1023_s1 + $0xa0] sm:$0xff]   ;;  %v818_v19 = vld [vmem:[%s1023_s1 + $0x98] sm:$0xff]   ;;  %v822_v23 = vld [vmem:[%s1023_s1 + $0x90] sm:$0xff]  }
   0x9   :  { %722 = vmatpush3.bf16.msra.mxu1 %v806_v7  ;;  %701 = vmatprep.subr.bf16.mxu0 %v807_v8  ;;  %v823_v24 = vld [vmem:[%s1023_s1 + $0x48] sm:$0xff]   ;;  %v827_v28 = vld [vmem:[%s1023_s1 + $0x40] sm:$0xff]   ;;  %v444_v43 = vld [vmem:[%s1025_s4 + $0x38] sm:$0xff] }
   0xa   :  { %723 = vmatprep.subr.bf16.mxu1 %v808_v9  ;;  %v824_v25 = vld [vmem:[%s1023_s1 + $0xc8] sm:$0xff]   ;;  %v828_v29 = vld [vmem:[%s1023_s1 + $0xc0] sm:$0xff]   ;;  %v443_v44 = vld [vmem:[%s1025_s4 + $0x30] sm:$0xff] }
   0xb   :  { %v825_v26 = vld [vmem:[%s1023_s1 + $0x8] sm:$0xff]   ;;  %v829_v30 = vld [vmem:[%s1023_s1] sm:$0xff]   ;;  %v440_v47 = vld [vmem:[%s1025_s4 + $0x18] sm:$0xff] }
   0xc   :  { %702 = vmatpush3.bf16.msra.mxu0 %v809_v10  ;;  %v826_v27 = vld [vmem:[%s1023_s1 + $0x88] sm:$0xff]   ;;  %v830_v31 = vld [vmem:[%s1023_s1 + $0x80] sm:$0xff]   ;;  %v439_v48 = vld [vmem:[%s1025_s4 + $0x10] sm:$0xff] }
   0xd   :  { %724 = vmatpush3.bf16.msra.mxu1 %v810_v11  ;;  %703 = vmatprep.subr.bf16.mxu0 %v811_v12  ;;  %v831_v32 = vld [vmem:[%s1024_s0 + $0x4] ss:$8 sps:$4 sm:$0x1f]   ;;  %v833_v33 = vld [vmem:[%s1024_s0] ss:$8 sps:$4 sm:$0x1f]   ;;  %vm635_vm9 = vmor %vm633_vm7, %vm634_vm8 }
   0xe   :  { %725 = vmatprep.subr.bf16.mxu1 %v812_v13  ;;  %337 = vmatprep.mubr.bf16.mxu0 %v831_v32  ;;  %v41_v34 = vshrl.u32 %v831_v32, 16  ;;  %v43_v35 = vshll.u32 %v831_v32, 16  ;;  %v34_v36 = vshrl.u32 %v833_v33, 16  ;;  %v36_v37 = vshll.u32 %v833_v33, 16  ;;  %v442_v45 = vld [vmem:[%s1025_s4 + $0x28] sm:$0xff]  ;;  %v441_v46 = vld [vmem:[%s1025_s4 + $0x20] sm:$0xff] }
   0xf   :  { %v438_v49 = vld [vmem:[%s1025_s4 + $0x8] sm:$0xff]  ;;  %v437_v50 = vld [vmem:[%s1025_s4] sm:$0xff] }
  0x10   :  { %704 = vmatpush3.bf16.msra.mxu0 %v813_v14  ;;  %v45_v38 = vrot.slane %v43_v35, 1  ;;  %v38_v39 = vrot.slane %v36_v37, 1 }
  0x11   :  { %726 = vmatpush3.bf16.msra.mxu1 %v814_v15  ;;  %705 = vmatprep.subr.bf16.mxu0 %v815_v16 }
  0x12   :  { %727 = vmatprep.subr.bf16.mxu1 %v816_v17  ;;  %v46_v40 = vor.u32 %v45_v38, %v41_v34  ;;  %v39_v41 = vor.u32 %v38_v39, %v34_v36 }
  0x14   :  { %706 = vmatpush3.bf16.msra.mxu0 %v817_v18  ;;  %378 = vmatprep.mubr.bf16.mxu1 %v46_v40 }
  0x15   :  { %728 = vmatpush3.bf16.msra.mxu1 %v818_v19  ;;  %707 = vmatprep.subr.bf16.mxu0 %v819_v20 }
  0x16   :  { %729 = vmatprep.subr.bf16.mxu1 %v820_v21 }
  0x18   :  { %708 = vmatpush3.bf16.msra.mxu0 %v821_v22 }
  0x19   :  { %730 = vmatpush3.bf16.msra.mxu1 %v822_v23  ;;  %709 = vmatprep.subr.bf16.mxu0 %v823_v24 }
  0x1a   :  { %731 = vmatprep.subr.bf16.mxu1 %v824_v25 }
  0x1c   :  { %710 = vmatpush3.bf16.msra.mxu0 %v825_v26 }
  0x1d   :  { %732 = vmatpush3.bf16.msra.mxu1 %v826_v27  ;;  %711 = vmatprep.subr.bf16.mxu0 %v827_v28 }
  0x1e   :  { %733 = vmatprep.subr.bf16.mxu1 %v828_v29 }
  0x20   :  { %712 = vmatpush3.bf16.msra.mxu0 %v829_v30 }
  0x21   :  { %734 = vmatpush3.bf16.msra.mxu1 %v830_v31  ;;  %759 = vmatprep.subr.mxu0 %v836_v42 }
  0x22   :  { %778 = vmatprep.subr.mxu1 %v836_v42 }
  0x23   :  { %338 = vmatmul.mubr.bf16.vlgmr.msra.gmra.mxu0 %v833_v33 }
  0x24   :  { %379 = vmatmul.mubr.bf16.vlgmr.msra.gmra.mxu1 %v39_v41  ;;  %760 = vmatpush3.msra.mxu0 %v444_v43 }
  0x25   :  { %779 = vmatpush3.msra.mxu1 %v444_v43  ;;  %761 = vmatprep.subr.mxu0 %v836_v42 }
  0x26   :  { %780 = vmatprep.subr.mxu1 %v836_v42  ;;  %762 = vmatpush3.msra.mxu0 %v443_v44 }
  0x27   :  { %781 = vmatpush3.msra.mxu1 %v443_v44  ;;  %763 = vmatprep.subr.mxu0 %v836_v42 }
  0x28   :  { %782 = vmatprep.subr.mxu1 %v836_v42  ;;  %764 = vmatpush3.msra.mxu0 %v442_v45 }
  0x29   :  { %783 = vmatpush3.msra.mxu1 %v442_v45  ;;  %765 = vmatprep.subr.mxu0 %v836_v42 }
  0x2a   :  { %784 = vmatprep.subr.mxu1 %v836_v42  ;;  %766 = vmatpush3.msra.mxu0 %v441_v46 }
  0x2b   :  { %785 = vmatpush3.msra.mxu1 %v441_v46  ;;  %767 = vmatprep.subr.mxu0 %v836_v42 }
  0x2c   :  { %786 = vmatprep.subr.mxu1 %v836_v42  ;;  %768 = vmatpush3.msra.mxu0 %v440_v47 }
  0x2d   :  { %787 = vmatpush3.msra.mxu1 %v440_v47  ;;  %769 = vmatprep.subr.mxu0 %v836_v42 }
  0x2e   :  { %788 = vmatprep.subr.mxu1 %v836_v42  ;;  %770 = vmatpush3.msra.mxu0 %v439_v48 }
  0x2f   :  { %789 = vmatpush3.msra.mxu1 %v439_v48  ;;  %771 = vmatprep.subr.mxu0 %v836_v42 }
  0x30   :  { %790 = vmatprep.subr.mxu1 %v836_v42  ;;  %772 = vmatpush3.msra.mxu0 %v438_v49 }
  0x31   :  { %775 = vmatprep.mubr.msk.f32.mxu0 %vm837_vm0, %v836_v42  ;;  %773 = vmatprep.subr.mxu0 %v836_v42 }
  0x32   :  { %791 = vmatpush3.msra.mxu1 %v438_v49  ;;  %774 = vmatpush3.msra.mxu0 %v437_v50  ;;  %v603_v49 = vlaneseq }
  0x33   :  { %792 = vmatprep.subr.mxu1 %v836_v42  ;;  %794 = vmatprep.mubr.msk.f32.mxu1 %vm837_vm0, %v836_v42 }
  0x34   :  { %793 = vmatpush3.msra.mxu1 %v437_v50  ;;  %v604_v50 = vshrl.u32 %v603_v49, 7 }
  0xe3   :  { %v713_v51 = vpop.f32.mrf.mxu0 }
  0xe4   :  { %v735_v54 = vpop.f32.mrf.mxu1 }
  0xe5   :  { %v714_v52 = vpop.f32.mrf.mxu0 }
  0xe6   :  { %v715_v55 = vadd.f32 %v714_v52, %v713_v51  ;;  %v736_v56 = vpop.f32.mrf.mxu1  ;;  %v435_v51 = vld [vmem:[%s1026_s2] sm:$0x1]  ;;  %v605_v52 = vsub.s32 0, %v604_v50 }
  0xe7   :  { %v716_v53 = vpop.f32.mrf.mxu0  ;;  %v737_v58 = vadd.f32 %v736_v56, %v735_v54 }
  0xe8   :  { %v738_v59 = vpop.f32.mrf.mxu1 }
  0xe9   :  { %v717_v57 = vpop.f32.mrf.mxu0  ;;  %v994_v60 = vadd.f32 %v737_v58, %v715_v55  ;;  %v436_v55 = vld [vmem:[%s1027_s3] sm:$0x1] }
  0xea   :  { %v718_v61 = vadd.f32 %v717_v57, %v716_v53  ;;  %v739_v62 = vpop.f32.mrf.mxu1 }
  0xeb   :  { %v388_v63 = vsel %vm387_vm1, %v994_v60, 0.0  ;;  %v396_v0 = vmul.f32 %v994_v60, %v994_v60  ;;  %v740_v1 = vadd.f32 %v739_v62, %v738_v59  ;;  %v408_v7 = vrot.slane %v994_v60, 5 }
  0xec   :  { %v389_v2 = vrot.slane %v388_v63, 4 }
  0xed   :  { %v397_v3 = vsel %vm387_vm1, %v396_v0, 0.0  ;;  %v1001_v4 = vadd.f32 %v740_v1, %v718_v61  ;;  %v423_v12 = vrot.slane %v396_v0, 5 }
  0xee   :  { %v390_v5 = vadd.f32 %v389_v2, %v388_v63  ;;  %v398_v6 = vrot.slane %v397_v3, 4 }
  0xef   :  { %v409_v8 = vrot.slane %v1001_v4, 5  ;;  %v420_v9 = vmul.f32 %v1001_v4, %v1001_v4 }
  0xf0   :  { %v399_v10 = vadd.f32 %v398_v6, %v397_v3  ;;  %v391_v11 = vrot.slane %v390_v5, 2 }
  0xf1   :  { %v410_v13 = vsel %vm407_vm2, %v408_v7, %v409_v8  ;;  %v424_v14 = vrot.slane %v420_v9, 5 }
  0xf2   :  { %v412_v15 = vsel %vm387_vm1, %v410_v13, 0.0  ;;  %v400_v16 = vrot.slane %v399_v10, 2  ;;  %v392_v20 = vadd.f32 %v391_v11, %v390_v5 }
  0xf3   :  { %v413_v17 = vrot.slane %v412_v15, 4  ;;  %v425_v18 = vsel %vm407_vm2, %v423_v12, %v424_v14 }
  0xf4   :  { %v427_v19 = vsel %vm387_vm1, %v425_v18, 0.0  ;;  %v401_v23 = vadd.f32 %v400_v16, %v399_v10  ;;  %v393_v26 = vrot.slane %v392_v20, 1 }
  0xf5   :  { %v414_v21 = vadd.f32 %v413_v17, %v412_v15  ;;  %v428_v22 = vrot.slane %v427_v19, 4 }
  0xf6   :  { %v402_v30 = vrot.slane %v401_v23, 1  ;;  %v394_v32 = vadd.f32 %v393_v26, %v392_v20 }
  0xf7   :  { %v415_v24 = vrot.slane %v414_v21, 2  ;;  %v429_v25 = vadd.f32 %v428_v22, %v427_v19 }
  0xf8   :  { %v403_v36 = vadd.f32 %v402_v30, %v401_v23 }
  0xf9   :  { %v416_v27 = vadd.f32 %v415_v24, %v414_v21  ;;  %v430_v28 = vrot.slane %v429_v25, 2 }
  0xfb   :  { %v417_v29 = vrot.slane %v416_v27, 1  ;;  %v431_v31 = vadd.f32 %v430_v28, %v429_v25 }
  0xfd   :  { %v418_v33 = vadd.f32 %v417_v29, %v416_v27  ;;  %v432_v34 = vrot.slane %v431_v31, 1 }
  0xff   :  { %v419_v35 = vadd.f32 %v418_v33, %v394_v32  ;;  %v433_v37 = vadd.f32 %v432_v34, %v431_v31 }
 0x101   :  { %776 = vmatmul.mubr.msk.f32.vlgmr.msra.gmra.mxu0 %vm445_vm3, %v419_v35  ;;  %v434_v38 = vadd.f32 %v433_v37, %v403_v36 }
 0x103   :  { %795 = vmatmul.mubr.msk.f32.vlgmr.msra.gmra.mxu1 %vm445_vm3, %v434_v38 }
 0x1c1   :  { %v515_v39 = vpop.f32.mrf.mxu0 }
 0x1c2   :  { %v519_v40 = vmul.f32 0.03125, %v515_v39 }
 0x1c3   :  { %v777_v41 = vpop.f32.mrf.mxu0  ;;  %v589_v42 = vpop.f32.mrf.mxu1 }
 0x1c4   :  { %v594_v43 = vmul.f32 %v519_v40, %v519_v40  ;;  %v593_v44 = vmul.f32 0.03125, %v589_v42 }
 0x1c5   :  { %v796_v45 = vpop.f32.mrf.mxu1 }
 0x1c6   :  { %v595_v46 = vsub.f32 %v593_v44, %v594_v43 }
 0x1c8   :  { %v596_v47 = vmax.f32 %v595_v46, 0.0 }
 0x1ca   :  { %v597_v48 = vadd.f32 1e-05, %v596_v47 }
 0x1cc   :  { %834 = vrsqrt.f32 %v597_v48 }
 0x1d9   :  { %v835_v53 = vpop.eup %834 }
 0x1da   :  { %v599_v54 = vmul.f32 %v835_v53, %v435_v51 }
 0x1dc   :  { %v600_v56 = vmul.f32 %v599_v54, %v519_v40  ;;  %v606_v57 = vrot.slane %v599_v54, %v605_v52 }
 0x1de   :  { %v601_v58 = vsub.f32 %v436_v55, %v600_v56  ;;  %v608_v59 = vmul.f32 %v606_v57, %v994_v60  ;;  %v622_v62 = vmul.f32 %v606_v57, %v1001_v4 }
 0x1e0   :  { %v613_v61 = vrot.slane %v601_v58, %v605_v52 }
 0x1e2   :  { %v615_v63 = vadd.f32 %v613_v61, %v608_v59  ;;  %v623_v0 = vadd.f32 %v622_v62, %v613_v61 }
 0x1e4   :  { %vm616_vm4 = vcmp.ge.f32.partialorder %v615_v63, 0.0  ;;  %v617_v1 = vmul.f32 0.05, %v615_v63  ;;  %vm624_vm5 = vcmp.ge.f32.partialorder %v623_v0, 0.0  ;;  %v625_v2 = vmul.f32 0.05, %v623_v0 }
 0x1e6   :  { %v618_v3 = vsel %vm616_vm4, %v615_v63, %v617_v1  ;;  %v626_v5 = vsel %vm624_vm5, %v623_v0, %v625_v2 }
 0x1e7   :  { %v619_v6 = vpack.c.bf16 %v618_v3, %v618_v3  ;;  %v696_v7 = vpack.c.bf16 %v626_v5, %v626_v5 }
 0x1e9   :  { %621 = vst.msk [vmem:[%s1028_s5] sm:$0x3] %vm620_vm6, %v619_v6  ;;  %v637_v8 = vshrl.u32 %v619_v6, 16  ;;  %v640_v60 = vshll.u32 %v619_v6, 16  ;;  %v646_v10 = vshll.u32 %v696_v7, 16 }
 0x1eb   :  { %v639_v4 = vrot.slane %v637_v8, 4  ;;  %v642_v9 = vrot.slane %v640_v60, 5  ;;  %v648_v13 = vrot.slane %v646_v10, 5 }
 0x1ed   :  { %v643_v11 = vor.u32 %v642_v9, %v639_v4 }
 0x1ef   :  { %v644_v12 = vrot.slane %v643_v11, 4 }
 0x1f1   :  { %v649_v14 = vsel %vm635_vm9, %v644_v12, %v648_v13 }
 0x1f2   :  { %652 = vst.msk [vmem:[%s1028_s5] sm:$0xc] %vm651_vm10, %v649_v14 }

// kernel: g11_forward.10
= control target key start
LH: loop header
LB: loop body
LE: loop exit
PB: predicated region body
PF: predicated region fallthrough
CT: control target
= control target key end

     0   :  { %v798_v0 = vmov 0.0   ;;  %vm799_vm0 = vmmov 0   ;;  %vm321_vm1 = vcmask 1043456   ;;  %vm341_vm2 = vcmask 1041408   ;;  %s1037_s1 = inlined_call_operand.vmem [shape: bf16[384,128], index: 1, kind: input, shape index: {}]   ;;  %s1038_s0 = inlined_call_operand.vmem [shape: bf16[12,128], index: 0, kind: input, shape index: {}]   ;;  %s1039_s4 = inlined_call_operand.vmem [shape: f32[128,128], index: 4, kind: input, shape index: {}]   ;;  %s1040_s2 = inlined_call_operand.vmem [shape: f32[1,128], index: 2, kind: input, shape index: {}]   ;;  %s1041_s3 = inlined_call_operand.vmem [shape: f32[1,128], index: 3, kind: input, shape index: {}]   ;;  %s1042_s5 = inlined_call_operand.vmem [shape: bf16[8,128], index: 5, kind: output, shape index: {}]  }
   0x1   :  { %677 = vmatprep.subr.bf16.mxu1 %v798_v0  ;;  %v769_v1 = vld [vmem:[%s1037_s1 + $0x78] sm:$0xff]   ;;  %693 = vmatprep.mubr.msk.bf16.mxu1 %vm799_vm0, %v798_v0  ;;  %v772_v4 = vld [vmem:[%s1037_s1 + $0x70] sm:$0xff]   ;;  %v775_v7 = vld [vmem:[%s1037_s1 + $0x68] sm:$0xff]   ;;  %vm567_vm5 = vcmask 1042432   ;;  %vm568_vm6 = vcmask 1046532  }
   0x2   :  { %v770_v2 = vld [vmem:[%s1037_s1 + $0xb8] sm:$0xff]   ;;  %612 = vmatprep.subr.bf16.mxu0 %v769_v1  ;;  %v773_v5 = vld [vmem:[%s1037_s1 + $0xb0] sm:$0xff]   ;;  %v776_v8 = vld [vmem:[%s1037_s1 + $0xa8] sm:$0xff]  }
   0x3   :  { %v771_v3 = vld [vmem:[%s1037_s1 + $0x38] sm:$0xff]   ;;  %678 = vmatpush3.bf16.msra.mxu1 %v770_v2  ;;  %v774_v6 = vld [vmem:[%s1037_s1 + $0x30] sm:$0xff]   ;;  %v777_v9 = vld [vmem:[%s1037_s1 + $0x28] sm:$0xff]  }
   0x4   :  { %613 = vmatpush3.bf16.msra.mxu0 %v771_v3  ;;  %679 = vmatprep.subr.bf16.mxu1 %v798_v0  ;;  %v778_v10 = vld [vmem:[%s1037_s1 + $0x60] sm:$0xff]   ;;  %v781_v13 = vld [vmem:[%s1037_s1 + $0x58] sm:$0xff]   ;;  %v784_v16 = vld [vmem:[%s1037_s1 + $0x50] sm:$0xff]  }
   0x5   :  { %614 = vmatprep.subr.bf16.mxu0 %v772_v4  ;;  %v779_v11 = vld [vmem:[%s1037_s1 + $0xa0] sm:$0xff]   ;;  %v782_v14 = vld [vmem:[%s1037_s1 + $0x98] sm:$0xff]   ;;  %v785_v17 = vld [vmem:[%s1037_s1 + $0x90] sm:$0xff]  }
   0x6   :  { %v780_v12 = vld [vmem:[%s1037_s1 + $0x20] sm:$0xff]   ;;  %v783_v15 = vld [vmem:[%s1037_s1 + $0x18] sm:$0xff]   ;;  %v786_v18 = vld [vmem:[%s1037_s1 + $0x10] sm:$0xff]  }
   0x7   :  { %680 = vmatpush3.bf16.msra.mxu1 %v773_v5  ;;  %v787_v19 = vld [vmem:[%s1037_s1 + $0x48] sm:$0xff]   ;;  %v21_v22 = vld [vmem:[%s1038_s0] sm:$0xf]  ;;  %v23_v23 = vld [vmem:[%s1038_s0 + $0x4] sm:$0x3] }
   0x8   :  { %615 = vmatpush3.bf16.msra.mxu0 %v774_v6  ;;  %681 = vmatprep.subr.bf16.mxu1 %v798_v0  ;;  %v788_v20 = vld [vmem:[%s1037_s1 + $0x88] sm:$0xff]   ;;  %v24_v24 = vld [vmem:[%s1038_s0] sm:$0xe]  ;;  %v581_v26 = vcombine.low %v21_v22, %v23_v23  ;;  %v22_v32 = vld [vmem:[%s1038_s0 + $0x4] sm:$0x1] }
   0x9   :  { %616 = vmatprep.subr.bf16.mxu0 %v775_v7  ;;  %v789_v21 = vld [vmem:[%s1037_s1 + $0x8] sm:$0xff]   ;;  %v790_v25 = vld [vmem:[%s1037_s1 + $0x40] sm:$0xff]   ;;  %v582_v27 = vcombine.low %v24_v24, %v23_v23  ;;  %v580_v36 = vcombine.low %v21_v22, %v22_v32  ;;  %v386_v37 = vld [vmem:[%s1039_s4 + $0x78] sm:$0xff] }
   0xa   :  { %v791_v28 = vld [vmem:[%s1037_s1 + $0x80] sm:$0xff]   ;;  %v35_v29 = vshrl.u32 %v581_v26, 16  ;;  %v37_v30 = vshll.u32 %v581_v26, 16  ;;  %v385_v38 = vld [vmem:[%s1039_s4 + $0x70] sm:$0xff]  ;;  %v384_v39 = vld [vmem:[%s1039_s4 + $0x68] sm:$0xff] }
   0xb   :  { %682 = vmatpush3.bf16.msra.mxu1 %v776_v8  ;;  %v792_v31 = vld [vmem:[%s1037_s1] sm:$0xff]   ;;  %v45_v34 = vrot.slane %v582_v27, 1  ;;  %v382_v41 = vld [vmem:[%s1039_s4 + $0x58] sm:$0xff]  ;;  %v381_v42 = vld [vmem:[%s1039_s4 + $0x50] sm:$0xff] }
   0xc   :  { %617 = vmatpush3.bf16.msra.mxu0 %v777_v9  ;;  %683 = vmatprep.subr.bf16.mxu1 %v798_v0  ;;  %v39_v33 = vrot.slane %v37_v30, 1  ;;  %v383_v40 = vld [vmem:[%s1039_s4 + $0x60] sm:$0xff]  ;;  %v380_v43 = vld [vmem:[%s1039_s4 + $0x48] sm:$0xff]  ;;  %v378_v45 = vld [vmem:[%s1039_s4 + $0x38] sm:$0xff] }
   0xd   :  { %618 = vmatprep.subr.bf16.mxu0 %v778_v10  ;;  %v379_v44 = vld [vmem:[%s1039_s4 + $0x40] sm:$0xff]  ;;  %v377_v46 = vld [vmem:[%s1039_s4 + $0x30] sm:$0xff]  ;;  %v376_v47 = vld [vmem:[%s1039_s4 + $0x28] sm:$0xff] }
   0xe   :  { %v40_v35 = vor.u32 %v39_v33, %v35_v29  ;;  %v375_v48 = vld [vmem:[%s1039_s4 + $0x20] sm:$0xff]  ;;  %v374_v49 = vld [vmem:[%s1039_s4 + $0x18] sm:$0xff]  ;;  %v373_v50 = vld [vmem:[%s1039_s4 + $0x10] sm:$0xff] }
   0xf   :  { %684 = vmatpush3.bf16.msra.mxu1 %v779_v11  ;;  %v372_v51 = vld [vmem:[%s1039_s4 + $0x8] sm:$0xff]  ;;  %v371_v52 = vld [vmem:[%s1039_s4] sm:$0xff]  ;;  %vm569_vm7 = vmor %vm567_vm5, %vm568_vm6 }
  0x10   :  { %619 = vmatpush3.bf16.msra.mxu0 %v780_v12  ;;  %685 = vmatprep.subr.bf16.mxu1 %v798_v0 }
  0x11   :  { %620 = vmatprep.subr.bf16.mxu0 %v781_v13  ;;  %271 = vmatprep.mubr.bf16.mxu0 %v40_v35 }
  0x13   :  { %686 = vmatpush3.bf16.msra.mxu1 %v782_v14 }
  0x14   :  { %621 = vmatpush3.bf16.msra.mxu0 %v783_v15  ;;  %687 = vmatprep.subr.bf16.mxu1 %v798_v0 }
  0x15   :  { %622 = vmatprep.subr.bf16.mxu0 %v784_v16 }
  0x17   :  { %688 = vmatpush3.bf16.msra.mxu1 %v785_v17 }
  0x18   :  { %623 = vmatpush3.bf16.msra.mxu0 %v786_v18  ;;  %689 = vmatprep.subr.bf16.mxu1 %v798_v0 }
  0x19   :  { %624 = vmatprep.subr.bf16.mxu0 %v787_v19 }
  0x1b   :  { %690 = vmatpush3.bf16.msra.mxu1 %v788_v20 }
  0x1c   :  { %625 = vmatpush3.bf16.msra.mxu0 %v789_v21  ;;  %691 = vmatprep.subr.bf16.mxu1 %v798_v0 }
  0x1d   :  { %626 = vmatprep.subr.bf16.mxu0 %v790_v25 }
  0x1f   :  { %692 = vmatpush3.bf16.msra.mxu1 %v791_v28 }
  0x20   :  { %627 = vmatpush3.bf16.msra.mxu0 %v792_v31  ;;  %732 = vmatprep.subr.mxu1 %v798_v0 }
  0x21   :  { %697 = vmatprep.subr.mxu0 %v798_v0 }
  0x22   :  { %694 = vmatmul.mubr.bf16.vlgmr.msra.gmra.mxu1 %v45_v34 }
  0x23   :  { %272 = vmatmul.mubr.bf16.vlgmr.msra.gmra.mxu0 %v580_v36  ;;  %733 = vmatpush3.msra.mxu1 %v386_v37 }
  0x24   :  { %698 = vmatpush3.msra.mxu0 %v386_v37  ;;  %734 = vmatprep.subr.mxu1 %v798_v0 }
  0x25   :  { %699 = vmatprep.subr.mxu0 %v798_v0  ;;  %729 = vmatprep.mubr.msk.f32.mxu0 %vm799_vm0, %v798_v0 }
  0x26   :  { %764 = vmatprep.mubr.msk.f32.mxu1 %vm799_vm0, %v798_v0  ;;  %700 = vmatpush3.msra.mxu0 %v385_v38 }
  0x27   :  { %735 = vmatpush3.msra.mxu1 %v385_v38  ;;  %701 = vmatprep.subr.mxu0 %v798_v0 }
  0x28   :  { %736 = vmatprep.subr.mxu1 %v798_v0  ;;  %702 = vmatpush3.msra.mxu0 %v384_v39 }
  0x29   :  { %737 = vmatpush3.msra.mxu1 %v384_v39  ;;  %703 = vmatprep.subr.mxu0 %v798_v0 }
  0x2a   :  { %738 = vmatprep.subr.mxu1 %v798_v0  ;;  %704 = vmatpush3.msra.mxu0 %v383_v40 }
  0x2b   :  { %739 = vmatpush3.msra.mxu1 %v383_v40  ;;  %705 = vmatprep.subr.mxu0 %v798_v0 }
  0x2c   :  { %740 = vmatprep.subr.mxu1 %v798_v0  ;;  %706 = vmatpush3.msra.mxu0 %v382_v41 }
  0x2d   :  { %741 = vmatpush3.msra.mxu1 %v382_v41  ;;  %707 = vmatprep.subr.mxu0 %v798_v0 }
  0x2e   :  { %742 = vmatprep.subr.mxu1 %v798_v0  ;;  %708 = vmatpush3.msra.mxu0 %v381_v42 }
  0x2f   :  { %743 = vmatpush3.msra.mxu1 %v381_v42  ;;  %709 = vmatprep.subr.mxu0 %v798_v0 }
  0x30   :  { %744 = vmatprep.subr.mxu1 %v798_v0  ;;  %710 = vmatpush3.msra.mxu0 %v380_v43 }
  0x31   :  { %745 = vmatpush3.msra.mxu1 %v380_v43  ;;  %711 = vmatprep.subr.mxu0 %v798_v0 }
  0x32   :  { %746 = vmatprep.subr.mxu1 %v798_v0  ;;  %712 = vmatpush3.msra.mxu0 %v379_v44 }
  0x33   :  { %747 = vmatpush3.msra.mxu1 %v379_v44  ;;  %713 = vmatprep.subr.mxu0 %v798_v0 }
  0x34   :  { %748 = vmatprep.subr.mxu1 %v798_v0  ;;  %714 = vmatpush3.msra.mxu0 %v378_v45 }
  0x35   :  { %749 = vmatpush3.msra.mxu1 %v378_v45  ;;  %715 = vmatprep.subr.mxu0 %v798_v0 }
  0x36   :  { %750 = vmatprep.subr.mxu1 %v798_v0  ;;  %716 = vmatpush3.msra.mxu0 %v377_v46 }
  0x37   :  { %751 = vmatpush3.msra.mxu1 %v377_v46  ;;  %717 = vmatprep.subr.mxu0 %v798_v0 }
  0x38   :  { %752 = vmatprep.subr.mxu1 %v798_v0  ;;  %718 = vmatpush3.msra.mxu0 %v376_v47 }
  0x39   :  { %753 = vmatpush3.msra.mxu1 %v376_v47  ;;  %719 = vmatprep.subr.mxu0 %v798_v0 }
  0x3a   :  { %754 = vmatprep.subr.mxu1 %v798_v0  ;;  %720 = vmatpush3.msra.mxu0 %v375_v48 }
  0x3b   :  { %755 = vmatpush3.msra.mxu1 %v375_v48  ;;  %721 = vmatprep.subr.mxu0 %v798_v0 }
  0x3c   :  { %756 = vmatprep.subr.mxu1 %v798_v0  ;;  %722 = vmatpush3.msra.mxu0 %v374_v49 }
  0x3d   :  { %757 = vmatpush3.msra.mxu1 %v374_v49  ;;  %723 = vmatprep.subr.mxu0 %v798_v0  ;;  %v538_v49 = vlaneseq }
  0x3e   :  { %758 = vmatprep.subr.mxu1 %v798_v0  ;;  %724 = vmatpush3.msra.mxu0 %v373_v50 }
  0x3f   :  { %759 = vmatpush3.msra.mxu1 %v373_v50  ;;  %725 = vmatprep.subr.mxu0 %v798_v0  ;;  %v539_v50 = vshrl.u32 %v538_v49, 7 }
  0x40   :  { %760 = vmatprep.subr.mxu1 %v798_v0  ;;  %726 = vmatpush3.msra.mxu0 %v372_v51 }
  0x41   :  { %761 = vmatpush3.msra.mxu1 %v372_v51  ;;  %727 = vmatprep.subr.mxu0 %v798_v0  ;;  %v369_v51 = vld [vmem:[%s1040_s2] sm:$0x1] }
  0x42   :  { %762 = vmatprep.subr.mxu1 %v798_v0  ;;  %728 = vmatpush3.msra.mxu0 %v371_v52 }
  0x43   :  { %763 = vmatpush3.msra.mxu1 %v371_v52  ;;  %v540_v52 = vsub.s32 0, %v539_v50 }
  0xe2   :  { %v314_v53 = vpop.f32.mrf.mxu1 }
  0xe3   :  { %v628_v54 = vpop.f32.mrf.mxu0 }
  0xe4   :  { %v695_v55 = vpop.f32.mrf.mxu1 }
  0xe5   :  { %v629_v56 = vpop.f32.mrf.mxu0  ;;  %v370_v55 = vld [vmem:[%s1041_s3] sm:$0x1] }
  0xe6   :  { %v630_v57 = vadd.f32 %v629_v56, %v628_v54  ;;  %v317_v58 = vpop.f32.mrf.mxu1 }
  0xe7   :  { %v631_v59 = vpop.f32.mrf.mxu0 }
  0xe8   :  { %v1008_v60 = vadd.f32 %v630_v57, %v314_v53  ;;  %v696_v61 = vpop.f32.mrf.mxu1 }
  0xe9   :  { %v632_v62 = vpop.f32.mrf.mxu0 }
  0xea   :  { %v322_v63 = vsel %vm321_vm1, %v1008_v60, 0.0  ;;  %v330_v0 = vmul.f32 %v1008_v60, %v1008_v60  ;;  %v633_v1 = vadd.f32 %v632_v62, %v631_v59  ;;  %v342_v7 = vrot.slane %v1008_v60, 6 }
  0xeb   :  { %v323_v2 = vrot.slane %v322_v63, 4 }
  0xec   :  { %v331_v3 = vsel %vm321_vm1, %v330_v0, 0.0  ;;  %v1015_v4 = vadd.f32 %v633_v1, %v317_v58  ;;  %v357_v11 = vrot.slane %v330_v0, 6 }
  0xed   :  { %v324_v5 = vadd.f32 %v323_v2, %v322_v63  ;;  %v332_v6 = vrot.slane %v331_v3, 4 }
  0xee   :  { %v343_v8 = vrot.slane %v1015_v4, 6  ;;  %v354_v9 = vmul.f32 %v1015_v4, %v1015_v4 }
  0xef   :  { %v333_v10 = vadd.f32 %v332_v6, %v331_v3  ;;  %v325_v14 = vrot.slane %v324_v5, 2 }
  0xf0   :  { %v344_v12 = vsel %vm341_vm2, %v342_v7, %v343_v8  ;;  %v358_v13 = vrot.slane %v354_v9, 6 }
  0xf1   :  { %v346_v15 = vsel %vm321_vm1, %v344_v12, 0.0  ;;  %v334_v18 = vrot.slane %v333_v10, 2  ;;  %v326_v21 = vadd.f32 %v325_v14, %v324_v5 }
  0xf2   :  { %v347_v16 = vrot.slane %v346_v15, 4  ;;  %v359_v17 = vsel %vm341_vm2, %v357_v11, %v358_v13 }
  0xf3   :  { %v361_v19 = vsel %vm321_vm1, %v359_v17, 0.0  ;;  %v335_v24 = vadd.f32 %v334_v18, %v333_v10  ;;  %v327_v26 = vrot.slane %v326_v21, 1 }
  0xf4   :  { %v362_v20 = vrot.slane %v361_v19, 4  ;;  %v348_v22 = vadd.f32 %v347_v16, %v346_v15 }
  0xf5   :  { %v336_v30 = vrot.slane %v335_v24, 1  ;;  %v328_v32 = vadd.f32 %v327_v26, %v326_v21 }
  0xf6   :  { %v349_v23 = vrot.slane %v348_v22, 2  ;;  %v363_v25 = vadd.f32 %v362_v20, %v361_v19 }
  0xf7   :  { %v337_v36 = vadd.f32 %v336_v30, %v335_v24 }
  0xf8   :  { %v350_v27 = vadd.f32 %v349_v23, %v348_v22  ;;  %v364_v28 = vrot.slane %v363_v25, 2 }
  0xfa   :  { %v351_v29 = vrot.slane %v350_v27, 1  ;;  %v365_v31 = vadd.f32 %v364_v28, %v363_v25 }
  0xfc   :  { %v352_v33 = vadd.f32 %v351_v29, %v350_v27  ;;  %v366_v34 = vrot.slane %v365_v31, 1 }
  0xfe   :  { %v353_v35 = vadd.f32 %v352_v33, %v328_v32  ;;  %v367_v37 = vadd.f32 %v366_v34, %v365_v31 }
 0x100   :  { %730 = vmatmul.mubr.f32.vlgmr.msra.gmra.mxu0 %v353_v35  ;;  %v368_v38 = vadd.f32 %v367_v37, %v337_v36 }
 0x102   :  { %765 = vmatmul.mubr.f32.vlgmr.msra.gmra.mxu1 %v368_v38 }
 0x1c0   :  { %v453_v39 = vpop.f32.mrf.mxu0 }
 0x1c1   :  { %v457_v40 = vmul.f32 0.0078125, %v453_v39 }
 0x1c2   :  { %v731_v41 = vpop.f32.mrf.mxu0  ;;  %v524_v42 = vpop.f32.mrf.mxu1 }
 0x1c3   :  { %v529_v43 = vmul.f32 %v457_v40, %v457_v40  ;;  %v528_v44 = vmul.f32 0.0078125, %v524_v42 }
 0x1c4   :  { %v766_v45 = vpop.f32.mrf.mxu1 }
 0x1c5   :  { %v530_v46 = vsub.f32 %v528_v44, %v529_v43 }
 0x1c7   :  { %v531_v47 = vmax.f32 %v530_v46, 0.0 }
 0x1c9   :  { %v532_v48 = vadd.f32 1e-05, %v531_v47 }
 0x1cb   :  { %796 = vrsqrt.f32 %v532_v48 }
 0x1d8   :  { %v797_v53 = vpop.eup %796 }
 0x1d9   :  { %v534_v54 = vmul.f32 %v797_v53, %v369_v51 }
 0x1db   :  { %v535_v56 = vmul.f32 %v534_v54, %v457_v40  ;;  %v541_v57 = vrot.slane %v534_v54, %v540_v52 }
 0x1dd   :  { %v536_v58 = vsub.f32 %v370_v55, %v535_v56  ;;  %v543_v59 = vmul.f32 %v541_v57, %v1008_v60  ;;  %v556_v62 = vmul.f32 %v541_v57, %v1015_v4 }
 0x1df   :  { %v548_v61 = vrot.slane %v536_v58, %v540_v52 }
 0x1e1   :  { %v550_v63 = vadd.f32 %v548_v61, %v543_v59  ;;  %v557_v0 = vadd.f32 %v556_v62, %v548_v61 }
 0x1e3   :  { %vm551_vm3 = vcmp.ge.f32.partialorder %v550_v63, 0.0  ;;  %v552_v1 = vmul.f32 0.05, %v550_v63  ;;  %vm558_vm4 = vcmp.ge.f32.partialorder %v557_v0, 0.0  ;;  %v559_v2 = vmul.f32 0.05, %v557_v0 }
 0x1e5   :  { %v553_v3 = vsel %vm551_vm3, %v550_v63, %v552_v1  ;;  %v560_v5 = vsel %vm558_vm4, %v557_v0, %v559_v2 }
 0x1e6   :  { %v554_v6 = vpack.c.bf16 %v553_v3, %v553_v3  ;;  %v611_v7 = vpack.c.bf16 %v560_v5, %v560_v5 }
 0x1e8   :  { %555 = vst [vmem:[%s1042_s5] sm:$0x3] %v554_v6  ;;  %v609_v60 = vrot.slane %v554_v6, 9  ;;  %v572_v8 = vrot.slane %v611_v7, 5 }
 0x1ea   :  { %v573_v4 = vsel %vm569_vm7, %v609_v60, %v572_v8 }
 0x1eb   :  { %575 = vst [vmem:[%s1042_s5] sm:$0xc] %v573_v4 }

// kernel: g11_forward.8
= control target key start
LH: loop header
LB: loop body
LE: loop exit
PB: predicated region body
PF: predicated region fallthrough
CT: control target
= control target key end

     0   :  { %v753_v0 = vmov 0.0   ;;  %vm754_vm0 = vmmov 0   ;;  %vm321_vm1 = vcmask 519168   ;;  %vm341_vm2 = vcmask 1041408   ;;  %s952_s1 = inlined_call_operand.vmem [shape: bf16[384,64], index: 1, kind: input, shape index: {}]   ;;  %s953_s0 = inlined_call_operand.vmem [shape: bf16[12,128], index: 0, kind: input, shape index: {}]   ;;  %s954_s4 = inlined_call_operand.vmem [shape: f32[64,64], index: 4, kind: input, shape index: {}]   ;;  %s955_s2 = inlined_call_operand.vmem [shape: f32[1,64], index: 2, kind: input, shape index: {}]   ;;  %s956_s3 = inlined_call_operand.vmem [shape: f32[1,64], index: 3, kind: input, shape index: {}]   ;;  %s957_s5 = inlined_call_operand.vmem [shape: bf16[8,64], index: 5, kind: output, shape index: {}]  }
   0x1   :  { %664 = vmatprep.subr.bf16.mxu1 %v753_v0  ;;  %v724_v1 = vld [vmem:[%s952_s1 + $0x78] sm:$0xff]   ;;  %680 = vmatprep.mubr.msk.bf16.mxu1 %vm754_vm0, %v753_v0  ;;  %v727_v4 = vld [vmem:[%s952_s1 + $0x70] sm:$0xff]   ;;  %v730_v7 = vld [vmem:[%s952_s1 + $0x68] sm:$0xff]   ;;  %vm379_vm3 = vcmask 523264   ;;  %vm567_vm6 = vcmask 1042432   ;;  %vm568_vm7 = vcmask 1046532  }
   0x2   :  { %v725_v2 = vld [vmem:[%s952_s1 + $0xb8] sm:$0xff]   ;;  %615 = vmatprep.subr.bf16.mxu0 %v724_v1  ;;  %v728_v5 = vld [vmem:[%s952_s1 + $0xb0] sm:$0xff]   ;;  %v731_v8 = vld [vmem:[%s952_s1 + $0xa8] sm:$0xff]   ;;  %vm554_vm8 = vcmask 517120   ;;  %vm575_vm10 = vcmask 519170  }
   0x3   :  { %v726_v3 = vld [vmem:[%s952_s1 + $0x38] sm:$0xff]   ;;  %665 = vmatpush3.bf16.msra.mxu1 %v725_v2  ;;  %v729_v6 = vld [vmem:[%s952_s1 + $0x30] sm:$0xff]   ;;  %v732_v9 = vld [vmem:[%s952_s1 + $0x28] sm:$0xff]  }
   0x4   :  { %616 = vmatpush3.bf16.msra.mxu0 %v726_v3  ;;  %666 = vmatprep.subr.bf16.mxu1 %v753_v0  ;;  %v733_v10 = vld [vmem:[%s952_s1 + $0x60] sm:$0xff]   ;;  %v736_v13 = vld [vmem:[%s952_s1 + $0x58] sm:$0xff]   ;;  %v739_v16 = vld [vmem:[%s952_s1 + $0x50] sm:$0xff]  }
   0x5   :  { %617 = vmatprep.subr.bf16.mxu0 %v727_v4  ;;  %v734_v11 = vld [vmem:[%s952_s1 + $0xa0] sm:$0xff]   ;;  %v737_v14 = vld [vmem:[%s952_s1 + $0x98] sm:$0xff]   ;;  %v740_v17 = vld [vmem:[%s952_s1 + $0x90] sm:$0xff]  }
   0x6   :  { %v735_v12 = vld [vmem:[%s952_s1 + $0x20] sm:$0xff]   ;;  %v738_v15 = vld [vmem:[%s952_s1 + $0x18] sm:$0xff]   ;;  %v741_v18 = vld [vmem:[%s952_s1 + $0x10] sm:$0xff]  }
   0x7   :  { %667 = vmatpush3.bf16.msra.mxu1 %v728_v5  ;;  %v742_v19 = vld [vmem:[%s952_s1 + $0x48] sm:$0xff]   ;;  %v21_v22 = vld [vmem:[%s953_s0] sm:$0xf]  ;;  %v23_v23 = vld [vmem:[%s953_s0 + $0x4] sm:$0x3] }
   0x8   :  { %618 = vmatpush3.bf16.msra.mxu0 %v729_v6  ;;  %668 = vmatprep.subr.bf16.mxu1 %v753_v0  ;;  %v743_v20 = vld [vmem:[%s952_s1 + $0x88] sm:$0xff]   ;;  %v24_v24 = vld [vmem:[%s953_s0] sm:$0xe]  ;;  %v582_v26 = vcombine.low %v21_v22, %v23_v23  ;;  %v22_v32 = vld [vmem:[%s953_s0 + $0x4] sm:$0x1] }
   0x9   :  { %619 = vmatprep.subr.bf16.mxu0 %v730_v7  ;;  %v744_v21 = vld [vmem:[%s952_s1 + $0x8] sm:$0xff]   ;;  %v745_v25 = vld [vmem:[%s952_s1 + $0x40] sm:$0xff]   ;;  %v583_v27 = vcombine.low %v24_v24, %v23_v23  ;;  %v581_v36 = vcombine.low %v21_v22, %v22_v32  ;;  %v378_v37 = vld [vmem:[%s954_s4 + $0x38] sm:$0xff] }
   0xa   :  { %v746_v28 = vld [vmem:[%s952_s1 + $0x80] sm:$0xff]   ;;  %v35_v29 = vshrl.u32 %v582_v26, 16  ;;  %v37_v30 = vshll.u32 %v582_v26, 16  ;;  %v377_v38 = vld [vmem:[%s954_s4 + $0x30] sm:$0xff]  ;;  %v376_v39 = vld [vmem:[%s954_s4 + $0x28] sm:$0xff] }
   0xb   :  { %669 = vmatpush3.bf16.msra.mxu1 %v731_v8  ;;  %v747_v31 = vld [vmem:[%s952_s1] sm:$0xff]   ;;  %v45_v34 = vrot.slane %v583_v27, 1  ;;  %v374_v41 = vld [vmem:[%s954_s4 + $0x18] sm:$0xff]  ;;  %v373_v42 = vld [vmem:[%s954_s4 + $0x10] sm:$0xff] }
   0xc   :  { %620 = vmatpush3.bf16.msra.mxu0 %v732_v9  ;;  %670 = vmatprep.subr.bf16.mxu1 %v753_v0  ;;  %v39_v33 = vrot.slane %v37_v30, 1  ;;  %v375_v40 = vld [vmem:[%s954_s4 + $0x20] sm:$0xff]  ;;  %v372_v43 = vld [vmem:[%s954_s4 + $0x8] sm:$0xff]  ;;  %vm569_vm9 = vmor %vm567_vm6, %vm568_vm7 }
   0xd   :  { %621 = vmatprep.subr.bf16.mxu0 %v733_v10  ;;  %v371_v44 = vld [vmem:[%s954_s4] sm:$0xff] }
   0xe   :  { %v40_v35 = vor.u32 %v39_v33, %v35_v29 }
   0xf   :  { %671 = vmatpush3.bf16.msra.mxu1 %v734_v11 }
  0x10   :  { %622 = vmatpush3.bf16.msra.mxu0 %v735_v12  ;;  %672 = vmatprep.subr.bf16.mxu1 %v753_v0 }
  0x11   :  { %623 = vmatprep.subr.bf16.mxu0 %v736_v13  ;;  %271 = vmatprep.mubr.bf16.mxu0 %v40_v35 }
  0x13   :  { %673 = vmatpush3.bf16.msra.mxu1 %v737_v14 }
  0x14   :  { %624 = vmatpush3.bf16.msra.mxu0 %v738_v15  ;;  %674 = vmatprep.subr.bf16.mxu1 %v753_v0 }
  0x15   :  { %625 = vmatprep.subr.bf16.mxu0 %v739_v16 }
  0x17   :  { %675 = vmatpush3.bf16.msra.mxu1 %v740_v17 }
  0x18   :  { %626 = vmatpush3.bf16.msra.mxu0 %v741_v18  ;;  %676 = vmatprep.subr.bf16.mxu1 %v753_v0 }
  0x19   :  { %627 = vmatprep.subr.bf16.mxu0 %v742_v19 }
  0x1b   :  { %677 = vmatpush3.bf16.msra.mxu1 %v743_v20 }
  0x1c   :  { %628 = vmatpush3.bf16.msra.mxu0 %v744_v21  ;;  %678 = vmatprep.subr.bf16.mxu1 %v753_v0 }
  0x1d   :  { %629 = vmatprep.subr.bf16.mxu0 %v745_v25 }
  0x1f   :  { %679 = vmatpush3.bf16.msra.mxu1 %v746_v28 }
  0x20   :  { %630 = vmatpush3.bf16.msra.mxu0 %v747_v31  ;;  %703 = vmatprep.subr.mxu1 %v753_v0 }
  0x21   :  { %684 = vmatprep.subr.mxu0 %v753_v0 }
  0x22   :  { %681 = vmatmul.mubr.bf16.vlgmr.msra.gmra.mxu1 %v45_v34 }
  0x23   :  { %272 = vmatmul.mubr.bf16.vlgmr.msra.gmra.mxu0 %v581_v36  ;;  %719 = vmatprep.mubr.msk.f32.mxu1 %vm754_vm0, %v753_v0 }
  0x24   :  { %700 = vmatprep.mubr.msk.f32.mxu0 %vm754_vm0, %v753_v0  ;;  %685 = vmatpush3.msra.mxu0 %v378_v37 }
  0x25   :  { %704 = vmatpush3.msra.mxu1 %v378_v37  ;;  %686 = vmatprep.subr.mxu0 %v753_v0 }
  0x26   :  { %705 = vmatprep.subr.mxu1 %v753_v0  ;;  %687 = vmatpush3.msra.mxu0 %v377_v38 }
  0x27   :  { %706 = vmatpush3.msra.mxu1 %v377_v38  ;;  %688 = vmatprep.subr.mxu0 %v753_v0 }
  0x28   :  { %707 = vmatprep.subr.mxu1 %v753_v0  ;;  %689 = vmatpush3.msra.mxu0 %v376_v39 }
  0x29   :  { %708 = vmatpush3.msra.mxu1 %v376_v39  ;;  %690 = vmatprep.subr.mxu0 %v753_v0 }
  0x2a   :  { %709 = vmatprep.subr.mxu1 %v753_v0  ;;  %691 = vmatpush3.msra.mxu0 %v375_v40 }
  0x2b   :  { %710 = vmatpush3.msra.mxu1 %v375_v40  ;;  %692 = vmatprep.subr.mxu0 %v753_v0 }
  0x2c   :  { %711 = vmatprep.subr.mxu1 %v753_v0  ;;  %693 = vmatpush3.msra.mxu0 %v374_v41 }
  0x2d   :  { %712 = vmatpush3.msra.mxu1 %v374_v41  ;;  %694 = vmatprep.subr.mxu0 %v753_v0  ;;  %v537_v41 = vlaneseq }
  0x2e   :  { %713 = vmatprep.subr.mxu1 %v753_v0  ;;  %695 = vmatpush3.msra.mxu0 %v373_v42 }
  0x2f   :  { %714 = vmatpush3.msra.mxu1 %v373_v42  ;;  %696 = vmatprep.subr.mxu0 %v753_v0  ;;  %v538_v42 = vshrl.u32 %v537_v41, 7 }
  0x30   :  { %715 = vmatprep.subr.mxu1 %v753_v0  ;;  %697 = vmatpush3.msra.mxu0 %v372_v43 }
  0x31   :  { %716 = vmatpush3.msra.mxu1 %v372_v43  ;;  %698 = vmatprep.subr.mxu0 %v753_v0  ;;  %v369_v43 = vld [vmem:[%s955_s2] sm:$0x1] }
  0x32   :  { %717 = vmatprep.subr.mxu1 %v753_v0  ;;  %699 = vmatpush3.msra.mxu0 %v371_v44 }
  0x33   :  { %718 = vmatpush3.msra.mxu1 %v371_v44  ;;  %v539_v44 = vsub.s32 0, %v538_v42 }
  0xe2   :  { %v314_v45 = vpop.f32.mrf.mxu1 }
  0xe3   :  { %v631_v46 = vpop.f32.mrf.mxu0 }
  0xe4   :  { %v682_v47 = vpop.f32.mrf.mxu1 }
  0xe5   :  { %v632_v48 = vpop.f32.mrf.mxu0  ;;  %v370_v47 = vld [vmem:[%s956_s3] sm:$0x1] }
  0xe6   :  { %v633_v49 = vadd.f32 %v632_v48, %v631_v46  ;;  %v317_v50 = vpop.f32.mrf.mxu1 }
  0xe7   :  { %v634_v51 = vpop.f32.mrf.mxu0 }
  0xe8   :  { %v923_v52 = vadd.f32 %v633_v49, %v314_v45  ;;  %v683_v53 = vpop.f32.mrf.mxu1 }
  0xe9   :  { %v635_v54 = vpop.f32.mrf.mxu0 }
  0xea   :  { %v322_v55 = vsel %vm321_vm1, %v923_v52, 0.0  ;;  %v330_v56 = vmul.f32 %v923_v52, %v923_v52  ;;  %v636_v57 = vadd.f32 %v635_v54, %v634_v51  ;;  %v342_v63 = vrot.slane %v923_v52, 6 }
  0xeb   :  { %v323_v58 = vrot.slane %v322_v55, 4 }
  0xec   :  { %v331_v59 = vsel %vm321_vm1, %v330_v56, 0.0  ;;  %v930_v60 = vadd.f32 %v636_v57, %v317_v50  ;;  %v357_v4 = vrot.slane %v330_v56, 6 }
  0xed   :  { %v324_v61 = vadd.f32 %v323_v58, %v322_v55  ;;  %v332_v62 = vrot.slane %v331_v59, 4 }
  0xee   :  { %v343_v0 = vrot.slane %v930_v60, 6  ;;  %v354_v1 = vmul.f32 %v930_v60, %v930_v60 }
  0xef   :  { %v333_v2 = vadd.f32 %v332_v62, %v331_v59  ;;  %v325_v3 = vrot.slane %v324_v61, 2 }
  0xf0   :  { %v344_v5 = vsel %vm341_vm2, %v342_v63, %v343_v0  ;;  %v358_v6 = vrot.slane %v354_v1, 6 }
  0xf1   :  { %v346_v7 = vsel %vm321_vm1, %v344_v5, 0.0  ;;  %v334_v8 = vrot.slane %v333_v2, 2  ;;  %v326_v12 = vadd.f32 %v325_v3, %v324_v61 }
  0xf2   :  { %v347_v9 = vrot.slane %v346_v7, 4  ;;  %v359_v10 = vsel %vm341_vm2, %v357_v4, %v358_v6 }
  0xf3   :  { %v361_v11 = vsel %vm321_vm1, %v359_v10, 0.0  ;;  %v335_v15 = vadd.f32 %v334_v8, %v333_v2  ;;  %v327_v18 = vrot.slane %v326_v12, 1 }
  0xf4   :  { %v348_v13 = vadd.f32 %v347_v9, %v346_v7  ;;  %v362_v14 = vrot.slane %v361_v11, 4 }
  0xf5   :  { %v336_v22 = vrot.slane %v335_v15, 1  ;;  %v328_v24 = vadd.f32 %v327_v18, %v326_v12 }
  0xf6   :  { %v349_v16 = vrot.slane %v348_v13, 2  ;;  %v363_v17 = vadd.f32 %v362_v14, %v361_v11 }
  0xf7   :  { %v337_v28 = vadd.f32 %v336_v22, %v335_v15 }
  0xf8   :  { %v350_v19 = vadd.f32 %v349_v16, %v348_v13  ;;  %v364_v20 = vrot.slane %v363_v17, 2 }
  0xfa   :  { %v351_v21 = vrot.slane %v350_v19, 1  ;;  %v365_v23 = vadd.f32 %v364_v20, %v363_v17 }
  0xfc   :  { %v352_v25 = vadd.f32 %v351_v21, %v350_v19  ;;  %v366_v26 = vrot.slane %v365_v23, 1 }
  0xfe   :  { %v353_v27 = vadd.f32 %v352_v25, %v328_v24  ;;  %v367_v29 = vadd.f32 %v366_v26, %v365_v23 }
 0x100   :  { %701 = vmatmul.mubr.msk.f32.vlgmr.msra.gmra.mxu0 %vm379_vm3, %v353_v27  ;;  %v368_v30 = vadd.f32 %v367_v29, %v337_v28 }
 0x102   :  { %720 = vmatmul.mubr.msk.f32.vlgmr.msra.gmra.mxu1 %vm379_vm3, %v368_v30 }
 0x1c0   :  { %v449_v31 = vpop.f32.mrf.mxu0 }
 0x1c1   :  { %v453_v32 = vmul.f32 0.03125, %v449_v31 }
 0x1c2   :  { %v702_v33 = vpop.f32.mrf.mxu0  ;;  %v523_v34 = vpop.f32.mrf.mxu1 }
 0x1c3   :  { %v528_v35 = vmul.f32 %v453_v32, %v453_v32  ;;  %v527_v36 = vmul.f32 0.03125, %v523_v34 }
 0x1c4   :  { %v721_v37 = vpop.f32.mrf.mxu1 }
 0x1c5   :  { %v529_v38 = vsub.f32 %v527_v36, %v528_v35 }
 0x1c7   :  { %v530_v39 = vmax.f32 %v529_v38, 0.0 }
 0x1c9   :  { %v531_v40 = vadd.f32 1e-05, %v530_v39 }
 0x1cb   :  { %751 = vrsqrt.f32 %v531_v40 }
 0x1d8   :  { %v752_v45 = vpop.eup %751 }
 0x1d9   :  { %v533_v46 = vmul.f32 %v752_v45, %v369_v43 }
 0x1db   :  { %v534_v48 = vmul.f32 %v533_v46, %v453_v32  ;;  %v540_v49 = vrot.slane %v533_v46, %v539_v44 }
 0x1dd   :  { %v535_v50 = vsub.f32 %v370_v47, %v534_v48  ;;  %v542_v51 = vmul.f32 %v540_v49, %v923_v52  ;;  %v556_v54 = vmul.f32 %v540_v49, %v930_v60 }
 0x1df   :  { %v547_v53 = vrot.slane %v535_v50, %v539_v44 }
 0x1e1   :  { %v549_v55 = vadd.f32 %v547_v53, %v542_v51  ;;  %v557_v56 = vadd.f32 %v556_v54, %v547_v53 }
 0x1e3   :  { %vm550_vm4 = vcmp.ge.f32.partialorder %v549_v55, 0.0  ;;  %v551_v57 = vmul.f32 0.05, %v549_v55  ;;  %vm558_vm5 = vcmp.ge.f32.partialorder %v557_v56, 0.0  ;;  %v559_v58 = vmul.f32 0.05, %v557_v56 }
 0x1e5   :  { %v552_v59 = vsel %vm550_vm4, %v549_v55, %v551_v57  ;;  %v560_v61 = vsel %vm558_vm5, %v557_v56, %v559_v58 }
 0x1e6   :  { %v553_v62 = vpack.c.bf16 %v552_v59, %v552_v59  ;;  %v614_v63 = vpack.c.bf16 %v560_v61, %v560_v61 }
 0x1e8   :  { %555 = vst.msk [vmem:[%s957_s5] sm:$0x3] %vm554_vm8, %v553_v62  ;;  %v612_v52 = vrot.slane %v553_v62, 9  ;;  %v572_v60 = vrot.slane %v614_v63, 5 }
 0x1ea   :  { %v573_v0 = vsel %vm569_vm9, %v612_v52, %v572_v60 }
 0x1eb   :  { %576 = vst.msk [vmem:[%s957_s5] sm:$0xc] %vm575_vm10, %v573_v0 }

// kernel: g11_forward.11
= control target key start
LH: loop header
LB: loop body
LE: loop exit
PB: predicated region body
PF: predicated region fallthrough
CT: control target
= control target key end

     0   :  { %vm51_vm0 = vcmask 1046528   ;;  %vm30_vm1 = vsmask.f32 7424  ;;  %vm346_vm2 = vcmask 261120   ;;  %vm350_vm3 = vcmask 261122   ;;  %s589_s1 = inlined_call_operand.vmem [shape: bf16[384,32], index: 1, kind: input, shape index: {}]   ;;  %s590_s0 = inlined_call_operand.vmem [shape: bf16[20,128], index: 0, kind: input, shape index: {}]   ;;  %s591_s2 = inlined_call_operand.vmem [shape: f32[16,32], index: 2, kind: output, shape index: {}]  }
   0x1   :  { %v444_v0 = vld [vmem:[%s589_s1 + $0x78] sm:$0xff]   ;;  %v447_v3 = vld [vmem:[%s589_s1 + $0x70] sm:$0xff]   ;;  %v450_v6 = vld [vmem:[%s589_s1 + $0x68] sm:$0xff]   ;;  %vm352_vm4 = vcmask 254976  }
   0x2   :  { %v445_v1 = vld [vmem:[%s589_s1 + $0xb8] sm:$0xff]   ;;  %386 = vmatprep.subr.bf16.mxu0 %v444_v0  ;;  %v448_v4 = vld [vmem:[%s589_s1 + $0xb0] sm:$0xff]   ;;  %v451_v7 = vld [vmem:[%s589_s1 + $0xa8] sm:$0xff]  }
   0x3   :  { %v446_v2 = vld [vmem:[%s589_s1 + $0x38] sm:$0xff]   ;;  %424 = vmatprep.subr.bf16.mxu1 %v445_v1  ;;  %v449_v5 = vld [vmem:[%s589_s1 + $0x30] sm:$0xff]   ;;  %v452_v8 = vld [vmem:[%s589_s1 + $0x28] sm:$0xff]  }
   0x4   :  { %387 = vmatpush3.bf16.msra.mxu0 %v446_v2  ;;  %425 = vmatpush3.bf16.msra.mxu1 %v445_v1  ;;  %v453_v9 = vld [vmem:[%s589_s1 + $0x60] sm:$0xff]   ;;  %v456_v12 = vld [vmem:[%s589_s1 + $0x58] sm:$0xff]   ;;  %v459_v15 = vld [vmem:[%s589_s1 + $0x50] sm:$0xff]  }
   0x5   :  { %388 = vmatprep.subr.bf16.mxu0 %v447_v3  ;;  %426 = vmatprep.subr.bf16.mxu1 %v448_v4  ;;  %v454_v10 = vld [vmem:[%s589_s1 + $0xa0] sm:$0xff]   ;;  %v457_v13 = vld [vmem:[%s589_s1 + $0x98] sm:$0xff]   ;;  %v460_v16 = vld [vmem:[%s589_s1 + $0x90] sm:$0xff]  }
   0x6   :  { %v455_v11 = vld [vmem:[%s589_s1 + $0x20] sm:$0xff]   ;;  %v458_v14 = vld [vmem:[%s589_s1 + $0x18] sm:$0xff]   ;;  %v461_v17 = vld [vmem:[%s589_s1 + $0x10] sm:$0xff]  }
   0x7   :  { %v462_v18 = vld [vmem:[%s589_s1 + $0x48] sm:$0xff]   ;;  %v465_v21 = vld [vmem:[%s589_s1 + $0x40] sm:$0xff]  }
   0x8   :  { %389 = vmatpush3.bf16.msra.mxu0 %v449_v5  ;;  %427 = vmatpush3.bf16.msra.mxu1 %v448_v4  ;;  %v463_v19 = vld [vmem:[%s589_s1 + $0x88] sm:$0xff]   ;;  %v12_v22 = vld [vmem:[%s590_s0] sm:$0xf]  ;;  %v13_v23 = vld [vmem:[%s590_s0 + $0x4] sm:$0xf] }
   0x9   :  { %390 = vmatprep.subr.bf16.mxu0 %v450_v6  ;;  %428 = vmatprep.subr.bf16.mxu1 %v451_v7  ;;  %v464_v20 = vld [vmem:[%s589_s1 + $0x8] sm:$0xff]   ;;  %v466_v24 = vld [vmem:[%s589_s1 + $0x80] sm:$0xff]   ;;  %v358_v25 = vcombine.low %v12_v22, %v13_v23 }
   0xa   :  { %v469_v26 = vld [vmem:[%s590_s0 + $0x8] ss:$0 sps:$4 sm:$0x33]   ;;  %v16_v27 = vld [vmem:[%s590_s0] sm:$0xe] }
   0xb   :  { %v361_v28 = vcombine.low %v16_v27, %v13_v23  ;;  %v32_v29 = vshrl.u32 %v358_v25, 16  ;;  %v34_v30 = vshll.u32 %v358_v25, 16  ;;  %v39_v31 = vshll.u32 %v469_v26, 16  ;;  %v467_v33 = vld [vmem:[%s589_s1] sm:$0xff]  }
   0xc   :  { %391 = vmatpush3.bf16.msra.mxu0 %v452_v8  ;;  %429 = vmatpush3.bf16.msra.mxu1 %v451_v7  ;;  %v53_v32 = vrot.slane %v469_v26, 1  ;;  %v43_v35 = vshrl.u32 %v469_v26, 16  ;;  %v471_v42 = vld [vmem:[%s590_s0 + $0x8] ss:$0 sps:$4 sm:$0x11]  }
   0xd   :  { %392 = vmatprep.subr.bf16.mxu0 %v453_v9  ;;  %430 = vmatprep.subr.bf16.mxu1 %v454_v10  ;;  %v52_v34 = vrot.slane %v361_v28, 1  ;;  %v36_v36 = vrot.slane %v34_v30, 1  ;;  %v41_v37 = vrot.slane %v39_v31, 1 }
   0xf   :  { %v54_v38 = vsel %vm51_vm0, %v52_v34, %v53_v32  ;;  %v37_v39 = vor.u32 %v36_v36, %v32_v29  ;;  %v45_v40 = vor.u32 %v43_v35, %v41_v37 }
  0x10   :  { %393 = vmatpush3.bf16.msra.mxu0 %v455_v11  ;;  %431 = vmatpush3.bf16.msra.mxu1 %v454_v10 }
  0x11   :  { %394 = vmatprep.subr.bf16.mxu0 %v456_v12  ;;  %432 = vmatprep.subr.bf16.mxu1 %v457_v13  ;;  %v42_v41 = vsel %vm30_vm1, %v37_v39, %v41_v37 }
  0x12   :  { %440 = vmatprep.mubr.bf16.mxu1 %v54_v38  ;;  %281 = vmatprep.mubr.bf16.mxu0 %v42_v41 }
  0x14   :  { %395 = vmatpush3.bf16.msra.mxu0 %v458_v14  ;;  %433 = vmatpush3.bf16.msra.mxu1 %v457_v13 }
  0x15   :  { %396 = vmatprep.subr.bf16.mxu0 %v459_v15  ;;  %434 = vmatprep.subr.bf16.mxu1 %v460_v16 }
  0x18   :  { %397 = vmatpush3.bf16.msra.mxu0 %v461_v17  ;;  %435 = vmatpush3.bf16.msra.mxu1 %v460_v16 }
  0x19   :  { %398 = vmatprep.subr.bf16.mxu0 %v462_v18  ;;  %436 = vmatprep.subr.bf16.mxu1 %v463_v19 }
  0x1c   :  { %399 = vmatpush3.bf16.msra.mxu0 %v464_v20  ;;  %437 = vmatpush3.bf16.msra.mxu1 %v463_v19 }
  0x1d   :  { %400 = vmatprep.subr.bf16.mxu0 %v465_v21  ;;  %438 = vmatprep.subr.bf16.mxu1 %v466_v24 }
  0x20   :  { %401 = vmatpush3.bf16.msra.mxu0 %v467_v33  ;;  %439 = vmatpush3.bf16.msra.mxu1 %v466_v24 }
  0x23   :  { %282 = vmatmul.mubr.bf16.vlgmr.msra.gmra.mxu0 %v358_v25  ;;  %441 = vmatmul.mubr.bf16.vlgmr.msra.gmra.mxu1 %v53_v32 }
  0x24   :  { %289 = vmatprep.mubr.bf16.mxu0 %v45_v40 }
  0x2b   :  { %290 = vmatmul.mubr.bf16.gmra.mxu0 %v471_v42 }
  0xe3   :  { %v402_v43 = vpop.f32.mrf.mxu0  ;;  %v442_v44 = vpop.f32.mrf.mxu1 }
  0xe5   :  { %v403_v45 = vpop.f32.mrf.mxu0  ;;  %v331_v46 = vpop.f32.mrf.mxu1 }
  0xe6   :  { %v404_v47 = vadd.f32 %v403_v45, %v402_v43 }
  0xe7   :  { %v405_v48 = vpop.f32.mrf.mxu0  ;;  %v443_v49 = vpop.f32.mrf.mxu1 }
  0xe8   :  { %v332_v50 = vadd.f32 %v404_v47, %v331_v46 }
  0xe9   :  { %v406_v51 = vpop.f32.mrf.mxu0  ;;  %v334_v53 = vpop.f32.mrf.mxu1 }
  0xea   :  { %472 = vtanh.f32 %v332_v50  ;;  %v407_v52 = vadd.f32 %v406_v51, %v405_v48 }
  0xeb   :  { %v408_v54 = vpop.f32.mrf.mxu0 }
  0xec   :  { %v335_v55 = vadd.f32 %v407_v52, %v334_v53 }
  0xed   :  { %v409_v56 = vpop.f32.mrf.mxu0 }
  0xee   :  { %474 = vtanh.f32 %v335_v55  ;;  %v410_v57 = vadd.f32 %v409_v56, %v408_v54 }
  0xef   :  { %v411_v58 = vpop.f32.mrf.mxu0 }
  0xf0   :  { %v340_v59 = vadd.f32 %v442_v44, %v410_v57 }
  0xf1   :  { %v412_v60 = vpop.f32.mrf.mxu0 }
  0xf2   :  { %476 = vtanh.f32 %v340_v59 }
  0xf7   :  { %v473_v61 = vpop.eup %472 }
  0xf8   :  { %347 = vst.msk [vmem:[%s591_s2] sm:$0xff] %vm346_vm2, %v473_v61 }
  0xfb   :  { %v475_v62 = vpop.eup %474 }
  0xfc   :  { %351 = vst.msk [vmem:[%s591_s2 + $0x6] sm:$0xfc] %vm350_vm3, %v475_v62 }
  0xff   :  { %v477_v63 = vpop.eup %476 }
 0x100   :  { %353 = vst.msk [vmem:[%s591_s2 + $0xe] sm:$0x3] %vm352_vm4, %v477_v63 }

</bundles_post_ra>
